<compile_context>
chip_gen: v7x
topology: tpu7x:2x2x1
jax: 0.10.0
libtpu: 0.0.40
codegen_flags: <defaults>
</compile_context>

<pallas_src>
import functools

import jax
import jax.numpy as jnp
from jax.experimental import pallas as pl
from jax.experimental.pallas import tpu as pltpu


# --------------------------------------------------------------------------- #
# Kernel
# --------------------------------------------------------------------------- #
def _vq_kernel(x_ref, n2e_ref, e2_ref, et_ref,
               q_ref, idx_ref, hist_ref, sse_ref,
               *, tm, hw_valid, masked, use_mxu, bf16_cross):
    # x_ref:   (Bt, D, tm)  transposed tiles of flattened inputs (channels-major)
    # n2e_ref: (K, D)       -2 * codebook (the -2 is folded in wrapper-side)
    # e2_ref:  (K, 1)       per-code squared norms ||e_k||^2
    # et_ref:  (D, K)       codebook, pre-transposed (for the lookup)
    # q_ref:   (Bt, D, tm)  quantized outputs (lane-dense, transposed layout)
    # idx_ref: (Bt, 1, tm)  int32 code indices
    # hist_ref:(K, 1)       per-row-block code histogram (resident accumulator)
    # sse_ref: (1, 1)       per-row-block sum((q - x)^2) (resident accumulator)
    bt, d_dim, _ = x_ref.shape
    k_dim = e2_ref.shape[0]

    @pl.when(pl.program_id(1) == 0)
    def _init():
        hist_ref[...] = jnp.zeros_like(hist_ref)
        sse_ref[...] = jnp.zeros_like(sse_ref)

    n2e = n2e_ref[...]                      # (K, D)
    e2 = e2_ref[...]                        # (K, 1)
    et = et_ref[...]                        # (D, K)
    n2e_mm = n2e.astype(jnp.bfloat16) if (use_mxu and bf16_cross) else n2e

    # Column-validity mask: only needed when the spatial axis was padded to a
    # multiple of 128 (keeps output stores unmasked / lane-dense).
    if masked:
        col = (jax.lax.broadcasted_iota(jnp.int32, (1, tm), 1)
               + pl.program_id(1) * tm)
        validf = (col < hw_valid).astype(jnp.float32)          # (1, tm)

    k_iota = jax.lax.broadcasted_iota(jnp.int32, (k_dim, tm), 0)  # hoisted

    def process_row(b):
        x_b = x_ref[b]                                          # (D, tm)

        # dist = ||e||^2 - 2 e.x  (the constant ||x||^2 per column is dropped:
        # argmin over codes is invariant to a per-column offset).
        if use_mxu:
            x_mm = x_b.astype(jnp.bfloat16) if bf16_cross else x_b
            dist = e2 + jnp.dot(n2e_mm, x_mm,
                                preferred_element_type=jnp.float32)   # (K, tm)
        else:
            # Tiny-D path: D unrolled broadcast FMAs on the VPU, no MXU.
            dist = e2 + n2e[:, 0:1] * x_b[0:1, :]
            for d in range(1, d_dim):
                dist = dist + n2e[:, d:d + 1] * x_b[d:d + 1, :]

        min_d = jnp.min(dist, axis=0, keepdims=True)            # (1, tm)
        # first-minimum index, matching torch.argmin semantics
        idx = jnp.min(jnp.where(dist == min_d, k_iota, k_dim),
                      axis=0, keepdims=True).astype(jnp.int32)  # (1, tm)
        enc = (k_iota == idx).astype(jnp.float32)               # (K, tm) one-hot

        # codebook lookup -> (D, tm), always f32 so outputs are exact codes
        if use_mxu:
            q_b = jnp.dot(et, enc, preferred_element_type=jnp.float32)
        else:
            # Tiny-K path: K-way select/accumulate on the VPU, no MXU.
            q_b = et[:, 0:1] * enc[0:1, :]
            for kk in range(1, k_dim):
                q_b = q_b + et[:, kk:kk + 1] * enc[kk:kk + 1, :]

        q_ref[b] = q_b
        idx_ref[b] = idx     # int32 (int8/int16 would cut write traffic further)

        # fused reductions (padded columns masked out)
        enc_m = enc * validf if masked else enc
        hist_ref[...] += jnp.sum(enc_m, axis=1, keepdims=True)  # (K, 1)
        diff = q_b - x_b
        d2 = diff * diff
        if masked:
            d2 = d2 * validf
        sse_ref[...] += jnp.sum(d2, keepdims=True)              # (1, 1)

    if bt <= 8:
        for b in range(bt):          # short fixed trip count: unroll statically
            process_row(b)
    else:
        @pl.loop(0, bt)
        def _(b):
            process_row(b)


# --------------------------------------------------------------------------- #
# Straight-through estimator (no extra HBM pass in the forward)
# --------------------------------------------------------------------------- #
@jax.custom_vjp
def _straight_through(x, q):
    return q


def _st_fwd(x, q):
    return q, None


def _st_bwd(_, g):
    return g, jnp.zeros_like(g)   # cotangent flows to x only (VQ-VAE ST)


_straight_through.defvjp(_st_fwd, _st_bwd)


# --------------------------------------------------------------------------- #
# Wrapper
# --------------------------------------------------------------------------- #
def _round_up(x, m):
    return (x + m - 1) // m * m


def _largest_tile(total, cap):
    """Largest multiple of 128 that divides `total` (a 128-multiple) and <= cap."""
    cap = max(128, min(cap, total))
    cap -= cap % 128
    for t in range(cap, 127, -128):
        if total % t == 0:
            return t
    return 128


def vector_quantizer_ema_forward(x_nchw, embedding, commitment_cost, *,
                                 materialize_encodings=False,
                                 use_mxu=None, bf16_cross=None,
                                 target_tile_bytes=2 << 20,
                                 max_dist_tmp_bytes=4 << 20):
    """Eval-mode forward of VectorQuantizerEMA.

    Args:
      x_nchw:    (B, C, H, W) float32, C == embedding_dim
      embedding: (num_embeddings, embedding_dim) float32 codebook
      materialize_encodings: if True, 4th return is the (N, K) f32 one-hot
        (exact torch API); if False (default) it is the (N,) int32 indices.
      use_mxu / bf16_cross: None = auto (VPU path for tiny D/K; bf16 MXU cross
        otherwise -- rated throughput on v6e/v7x).
    Returns:
      (loss, quantized_nchw, perplexity, encodings_or_indices)
    """
    B, C, H, W = x_nchw.shape
    K, D = embedding.shape
    assert C == D, "channel dim must equal embedding_dim"
    HW = H * W
    N = B * HW

    if use_mxu is None:
        use_mxu = (D > 16) or (K > 128)
    if bf16_cross is None:
        bf16_cross = bool(use_mxu)

    # Pad spatial axis to a 128 multiple -> lane-dense, unmasked vst stores.
    HW_pad = _round_up(HW, 128)
    masked = HW_pad != HW

    # Lane tile capped so the (K, tm) dist/one-hot/iota temporaries stay bounded.
    # TODO(synk): for very large K, chunk the K axis inside the kernel instead.
    tm_cap = max(128, max_dist_tmp_bytes // (4 * 4 * K))
    tm = _largest_tile(HW_pad, tm_cap)
    n_j = HW_pad // tm

    # Batch rows per grid step: hit the per-step byte budget (>= ~1-2 MiB of x).
    row_bytes = D * tm * 4
    bt = max(1, min(B, target_tile_bytes // max(row_bytes, 1)))
    while B % bt:
        bt -= 1
    n_bb = B // bt

    x_f32 = x_nchw.astype(jnp.float32)
    x_flat = x_f32.reshape(B, C, HW)            # free reshape, no transpose
    if masked:
        x_flat = jnp.pad(x_flat, ((0, 0), (0, 0), (0, HW_pad - HW)))

    e = embedding.astype(jnp.float32)           # (K, D)
    n2e = -2.0 * e                              # fold -2 into the codebook once
    e2 = jnp.sum(e * e, axis=1, keepdims=True)  # (K, 1)
    et = e.T                                    # (D, K)

    kernel = functools.partial(_vq_kernel, tm=tm, hw_valid=HW, masked=masked,
                               use_mxu=use_mxu, bf16_cross=bf16_cross)

    cost = pl.CostEstimate(
        flops=int(4 * B * HW_pad * K * D),
        transcendentals=0,
        bytes_accessed=int((2 * B * D * HW_pad + B * HW_pad) * 4
                           + (2 * K * D + K) * 4))

    q_flat, idx, hist, sse = pl.pallas_call(
        kernel,
        out_shape=(
            jax.ShapeDtypeStruct((B, D, HW_pad), jnp.float32),   # quantized (transposed)
            jax.ShapeDtypeStruct((B, 1, HW_pad), jnp.int32),     # code indices
            jax.ShapeDtypeStruct((n_bb, K, 1), jnp.float32),     # per-row-block histogram
            jax.ShapeDtypeStruct((n_bb, 1, 1), jnp.float32),     # per-row-block SSE
        ),
        grid_spec=pltpu.PrefetchScalarGridSpec(
            num_scalar_prefetch=0,
            grid=(n_bb, n_j),
            in_specs=[
                pl.BlockSpec((bt, D, tm), lambda bi, j: (bi, 0, j)),   # x slab
                pl.BlockSpec((K, D), lambda bi, j: (0, 0)),            # -2*codebook
                pl.BlockSpec((K, 1), lambda bi, j: (0, 0)),            # ||e||^2
                pl.BlockSpec((D, K), lambda bi, j: (0, 0)),            # codebook^T
            ],
            out_specs=(
                pl.BlockSpec((bt, D, tm), lambda bi, j: (bi, 0, j)),
                pl.BlockSpec((bt, 1, tm), lambda bi, j: (bi, 0, j)),
                pl.BlockSpec((None, K, 1), lambda bi, j: (bi, 0, 0)),  # resident acc
                pl.BlockSpec((None, 1, 1), lambda bi, j: (bi, 0, 0)),  # resident acc
            ),
        ),
        compiler_params=pltpu.CompilerParams(
            dimension_semantics=("parallel", "arbitrary"),
            vmem_limit_bytes=32 * 1024 * 1024),
        cost_estimate=cost,
    )(x_flat, n2e, e2, et)

    if masked:
        q_flat = q_flat[:, :, :HW]
        idx = idx[:, :, :HW]
    q_bchw = q_flat.reshape(B, C, H, W)

    # commitment loss from the fused in-kernel SSE (no extra HBM pass over q/x)
    e_latent_loss = jnp.sum(sse) / jnp.float32(N * D)
    loss = commitment_cost * e_latent_loss

    # straight-through estimator: forward value is exactly q, no extra pass
    quantized_st = _straight_through(x_f32, q_bchw)

    # perplexity from the fused histogram (no (N, K) one-hot re-read)
    avg_probs = jnp.sum(hist, axis=0).reshape(K) / jnp.float32(N)
    perplexity = jnp.exp(-jnp.sum(avg_probs * jnp.log(avg_probs + 1e-10)))

    # flat ordering is b-major then (h, w) == torch's NHWC flatten
    idx_flat = idx[:, 0, :].reshape(N)
    if materialize_encodings:
        encodings = jax.nn.one_hot(idx_flat, K, dtype=jnp.float32)
        return loss, quantized_st, perplexity, encodings
    return loss, quantized_st, perplexity, idx_flat


# --------------------------------------------------------------------------- #
# Pure-JAX reference (mirrors the torch forward, eval mode)
# --------------------------------------------------------------------------- #
def _reference(x_nchw, embedding, commitment_cost):
    B, C, H, W = x_nchw.shape
    K, D = embedding.shape
    inputs = jnp.transpose(x_nchw, (0, 2, 3, 1)).astype(jnp.float32)
    flat = inputs.reshape(-1, D)
    dist = (jnp.sum(flat ** 2, axis=1, keepdims=True)
            + jnp.sum(embedding ** 2, axis=1)
            - 2.0 * flat @ embedding.T)
    idx = jnp.argmin(dist, axis=1)
    enc = jax.nn.one_hot(idx, K, dtype=jnp.float32)
    quantized = (enc @ embedding).reshape(inputs.shape)
    e_latent_loss = jnp.mean((quantized - inputs) ** 2)
    loss = commitment_cost * e_latent_loss
    quantized_st = inputs + jax.lax.stop_gradient(quantized - inputs)
    avg_probs = jnp.mean(enc, axis=0)
    perplexity = jnp.exp(-jnp.sum(avg_probs * jnp.log(avg_probs + 1e-10)))
    return loss, jnp.transpose(quantized_st, (0, 3, 1, 2)), perplexity, enc


if __name__ == "__main__":
    commitment_cost = 0.25
    key = jax.random.PRNGKey(0)
    k1, k2, k3, k4 = jax.random.split(key, 4)

    # ---- Config 1: tiny TSRCNet-like config (VPU path, exact check) --------
    B, D, H, W, K = 2, 4, 16, 16, 16
    x = jax.random.normal(k1, (B, D, H, W), dtype=jnp.float32)
    emb = jax.random.normal(k2, (K, D), dtype=jnp.float32)

    out = vector_quantizer_ema_forward(x, emb, commitment_cost,
                                       materialize_encodings=True)
    loss, quantized, perplexity, encodings = jax.block_until_ready(out)

    loss_r, quant_r, perp_r, enc_r = _reference(x, emb, commitment_cost)
    assert jnp.allclose(loss, loss_r, atol=1e-5), (loss, loss_r)
    assert jnp.allclose(quantized, quant_r, atol=1e-5)
    assert jnp.allclose(perplexity, perp_r, atol=1e-5), (perplexity, perp_r)
    assert jnp.allclose(encodings, enc_r)

    # ---- Config 2: larger codebook + non-128-multiple spatial (MXU path,
    #      padding/masking, f32 cross for a tight check) ----------------------
    B2, D2, H2, W2, K2 = 2, 64, 14, 14, 256
    x2 = jax.random.normal(k3, (B2, D2, H2, W2), dtype=jnp.float32)
    emb2 = jax.random.normal(k4, (K2, D2), dtype=jnp.float32)

    out2 = vector_quantizer_ema_forward(x2, emb2, commitment_cost,
                                        bf16_cross=False)
    loss2, quant2, perp2, idx2 = jax.block_until_ready(out2)
    loss2_r, quant2_r, perp2_r, enc2_r = _reference(x2, emb2, commitment_cost)
    idx2_r = jnp.argmax(enc2_r, axis=1).astype(jnp.int32)
    match = jnp.mean((idx2 == idx2_r).astype(jnp.float32))
    assert match >= 0.95, float(match)           # tolerant to rare near-tie flips
    assert jnp.allclose(loss2, loss2_r, rtol=2e-2, atol=1e-4), (loss2, loss2_r)
    assert jnp.allclose(perp2, perp2_r, rtol=5e-2), (perp2, perp2_r)
    assert quant2.shape == x2.shape

    # ---- Config 3: default path (bf16 MXU cross) -- compile/health check ----
    out3 = vector_quantizer_ema_forward(x2, emb2, commitment_cost)
    loss3, quant3, perp3, idx3 = jax.block_until_ready(out3)
    assert bool(jnp.isfinite(loss3)) and quant3.shape == x2.shape
    assert jnp.mean((idx3 == idx2).astype(jnp.float32)) >= 0.8

    print("KERNEL_OK")
</pallas_src>

<mosaic_0001>
module attributes {stable_mosaic.version = 11 : i64} {
  func.func @_vq_kernel(%arg0: i32, %arg1: i32, %arg2: memref<2x4x256xf32, #tpu.memory_space<vmem>>, %arg3: memref<16x4xf32, #tpu.memory_space<vmem>>, %arg4: memref<16x1xf32, #tpu.memory_space<vmem>>, %arg5: memref<4x16xf32, #tpu.memory_space<vmem>>, %arg6: memref<2x4x256xf32, #tpu.memory_space<vmem>>, %arg7: memref<2x1x256xi32, #tpu.memory_space<vmem>>, %arg8: memref<1x16x1xf32, #tpu.memory_space<vmem>>, %arg9: memref<1x1x1xf32, #tpu.memory_space<vmem>>) attributes {dimension_semantics = [#tpu.dimension_semantics<parallel>, #tpu.dimension_semantics<arbitrary>], iteration_bounds = array<i64: 1, 1>, scalar_prefetch = 0 : i64, scratch_operands = 0 : i64, tpu.core_type = #tpu.core_type<tc>, window_params = [{transform_indices = @transform_0, window_bounds = array<i64: 2, 4, 256>}, {pipeline_mode = #tpu.pipeline_mode<synchronous>, transform_indices = @transform_1, window_bounds = array<i64: 16, 4>}, {pipeline_mode = #tpu.pipeline_mode<synchronous>, transform_indices = @transform_2, window_bounds = array<i64: 16, 1>}, {pipeline_mode = #tpu.pipeline_mode<synchronous>, transform_indices = @transform_3, window_bounds = array<i64: 4, 16>}, {transform_indices = @transform_4, window_bounds = array<i64: 2, 4, 256>}, {transform_indices = @transform_5, window_bounds = array<i64: 2, 1, 256>}, {transform_indices = @transform_6, window_bounds = array<i64: 1, 16, 1>}, {transform_indices = @transform_7, window_bounds = array<i64: 1, 1, 1>}]} {
    %c0_i32 = arith.constant 0 : i32
    %0 = arith.cmpi eq, %arg1, %c0_i32 : i32
    %1 = arith.extui %0 : i1 to i32
    %c0_i32_0 = arith.constant 0 : i32
    %2 = arith.cmpi ne, %1, %c0_i32_0 : i32
    scf.if %2 {
      %cst_55 = arith.constant 0.000000e+00 : f32
      %329 = vector.broadcast %cst_55 : f32 to vector<16x1xf32>
      %c0_56 = arith.constant 0 : index
      %c0_57 = arith.constant 0 : index
      %c0_58 = arith.constant 0 : index
      %330 = vector.load %arg8[%c0_56, %c0_57, %c0_58] : memref<1x16x1xf32, #tpu.memory_space<vmem>>, vector<1x16x1xf32>
      %331 = vector.shape_cast %330 : vector<1x16x1xf32> to vector<16x1xf32>
      %332 = vector.shape_cast %329 : vector<16x1xf32> to vector<1x16x1xf32>
      tpu.vector_store %arg8[%c0_56, %c0_57, %c0_58], %332 {strides = array<i32>} : memref<1x16x1xf32, #tpu.memory_space<vmem>>, vector<1x16x1xf32>,
      %cst_59 = arith.constant 0.000000e+00 : f32
      %333 = vector.broadcast %cst_59 : f32 to vector<1x1xf32>
      %c0_60 = arith.constant 0 : index
      %c0_61 = arith.constant 0 : index
      %c0_62 = arith.constant 0 : index
      %334 = vector.load %arg9[%c0_60, %c0_61, %c0_62] : memref<1x1x1xf32, #tpu.memory_space<vmem>>, vector<1x1x1xf32>
      %335 = vector.shape_cast %334 : vector<1x1x1xf32> to vector<1x1xf32>
      %336 = vector.shape_cast %333 : vector<1x1xf32> to vector<1x1x1xf32>
      tpu.vector_store %arg9[%c0_60, %c0_61, %c0_62], %336 {strides = array<i32>} : memref<1x1x1xf32, #tpu.memory_space<vmem>>, vector<1x1x1xf32>,
    } else {
    }
    %c0 = arith.constant 0 : index
    %c0_1 = arith.constant 0 : index
    %3 = vector.load %arg3[%c0, %c0_1] : memref<16x4xf32, #tpu.memory_space<vmem>>, vector<16x4xf32>
    %c0_2 = arith.constant 0 : index
    %c0_3 = arith.constant 0 : index
    %4 = vector.load %arg4[%c0_2, %c0_3] : memref<16x1xf32, #tpu.memory_space<vmem>>, vector<16x1xf32>
    %c0_4 = arith.constant 0 : index
    %c0_5 = arith.constant 0 : index
    %5 = vector.load %arg5[%c0_4, %c0_5] : memref<4x16xf32, #tpu.memory_space<vmem>>, vector<4x16xf32>
    %6 = tpu.iota {dimensions = array<i32: 0>} : vector<16x256xi32>
    %c0_6 = arith.constant 0 : index
    %c0_7 = arith.constant 0 : index
    %c0_8 = arith.constant 0 : index
    %7 = vector.load %arg2[%c0_6, %c0_7, %c0_8] : memref<2x4x256xf32, #tpu.memory_space<vmem>>, vector<1x4x256xf32>
    %8 = vector.shape_cast %7 : vector<1x4x256xf32> to vector<4x256xf32>
    %9 = vector.extract_strided_slice %3 {offsets = [0, 0], sizes = [16, 1], strides = [1, 1]} : vector<16x4xf32> to vector<16x1xf32>
    %10 = vector.extract_strided_slice %8 {offsets = [0, 0], sizes = [1, 256], strides = [1, 1]} : vector<4x256xf32> to vector<1x256xf32>
    %11 = vector.broadcast %9 : vector<16x1xf32> to vector<16x256xf32>
    %12 = vector.broadcast %10 : vector<1x256xf32> to vector<16x256xf32>
    %13 = arith.mulf %11, %12 : vector<16x256xf32>
    %14 = vector.broadcast %4 : vector<16x1xf32> to vector<16x256xf32>
    %15 = arith.addf %14, %13 : vector<16x256xf32>
    %16 = vector.extract_strided_slice %3 {offsets = [0, 1], sizes = [16, 1], strides = [1, 1]} : vector<16x4xf32> to vector<16x1xf32>
    %17 = vector.extract_strided_slice %8 {offsets = [1, 0], sizes = [1, 256], strides = [1, 1]} : vector<4x256xf32> to vector<1x256xf32>
    %18 = vector.broadcast %16 : vector<16x1xf32> to vector<16x256xf32>
    %19 = vector.broadcast %17 : vector<1x256xf32> to vector<16x256xf32>
    %20 = arith.mulf %18, %19 : vector<16x256xf32>
    %21 = arith.addf %15, %20 : vector<16x256xf32>
    %22 = vector.extract_strided_slice %3 {offsets = [0, 2], sizes = [16, 1], strides = [1, 1]} : vector<16x4xf32> to vector<16x1xf32>
    %23 = vector.extract_strided_slice %8 {offsets = [2, 0], sizes = [1, 256], strides = [1, 1]} : vector<4x256xf32> to vector<1x256xf32>
    %24 = vector.broadcast %22 : vector<16x1xf32> to vector<16x256xf32>
    %25 = vector.broadcast %23 : vector<1x256xf32> to vector<16x256xf32>
    %26 = arith.mulf %24, %25 : vector<16x256xf32>
    %27 = arith.addf %21, %26 : vector<16x256xf32>
    %28 = vector.extract_strided_slice %3 {offsets = [0, 3], sizes = [16, 1], strides = [1, 1]} : vector<16x4xf32> to vector<16x1xf32>
    %29 = vector.extract_strided_slice %8 {offsets = [3, 0], sizes = [1, 256], strides = [1, 1]} : vector<4x256xf32> to vector<1x256xf32>
    %30 = vector.broadcast %28 : vector<16x1xf32> to vector<16x256xf32>
    %31 = vector.broadcast %29 : vector<1x256xf32> to vector<16x256xf32>
    %32 = arith.mulf %30, %31 : vector<16x256xf32>
    %33 = arith.addf %27, %32 : vector<16x256xf32>
    %cst = arith.constant dense<0x7F800000> : vector<256xf32>
    %34 = vector.multi_reduction <minimumf>, %33, %cst [0] : vector<16x256xf32> to vector<256xf32>
    %35 = vector.shape_cast %34 : vector<256xf32> to vector<1x256xf32>
    %36 = vector.broadcast %35 : vector<1x256xf32> to vector<16x256xf32>
    %37 = arith.cmpf oeq, %33, %36 : vector<16x256xf32>
    %c16_i32 = arith.constant 16 : i32
    %38 = vector.broadcast %c16_i32 : i32 to vector<16x256xi32>
    %39 = arith.select %37, %6, %38 : vector<16x256xi1>, vector<16x256xi32>
    %cst_9 = arith.constant dense<2147483647> : vector<256xi32>
    %40 = vector.multi_reduction <minsi>, %39, %cst_9 [0] : vector<16x256xi32> to vector<256xi32>
    %41 = vector.shape_cast %40 : vector<256xi32> to vector<1x256xi32>
    %42 = vector.broadcast %41 : vector<1x256xi32> to vector<16x256xi32>
    %43 = arith.cmpi eq, %6, %42 : vector<16x256xi32>
    %44 = arith.extui %43 : vector<16x256xi1> to vector<16x256xi32>
    %45 = arith.sitofp %44 : vector<16x256xi32> to vector<16x256xf32>
    %46 = vector.extract_strided_slice %5 {offsets = [0, 0], sizes = [4, 1], strides = [1, 1]} : vector<4x16xf32> to vector<4x1xf32>
    %47 = vector.extract_strided_slice %45 {offsets = [0, 0], sizes = [1, 256], strides = [1, 1]} : vector<16x256xf32> to vector<1x256xf32>
    %48 = vector.broadcast %46 : vector<4x1xf32> to vector<4x256xf32>
    %49 = vector.broadcast %47 : vector<1x256xf32> to vector<4x256xf32>
    %50 = arith.mulf %48, %49 : vector<4x256xf32>
    %51 = vector.extract_strided_slice %5 {offsets = [0, 1], sizes = [4, 1], strides = [1, 1]} : vector<4x16xf32> to vector<4x1xf32>
    %52 = vector.extract_strided_slice %45 {offsets = [1, 0], sizes = [1, 256], strides = [1, 1]} : vector<16x256xf32> to vector<1x256xf32>
    %53 = vector.broadcast %51 : vector<4x1xf32> to vector<4x256xf32>
    %54 = vector.broadcast %52 : vector<1x256xf32> to vector<4x256xf32>
    %55 = arith.mulf %53, %54 : vector<4x256xf32>
    %56 = arith.addf %50, %55 : vector<4x256xf32>
    %57 = vector.extract_strided_slice %5 {offsets = [0, 2], sizes = [4, 1], strides = [1, 1]} : vector<4x16xf32> to vector<4x1xf32>
    %58 = vector.extract_strided_slice %45 {offsets = [2, 0], sizes = [1, 256], strides = [1, 1]} : vector<16x256xf32> to vector<1x256xf32>
    %59 = vector.broadcast %57 : vector<4x1xf32> to vector<4x256xf32>
    %60 = vector.broadcast %58 : vector<1x256xf32> to vector<4x256xf32>
    %61 = arith.mulf %59, %60 : vector<4x256xf32>
    %62 = arith.addf %56, %61 : vector<4x256xf32>
    %63 = vector.extract_strided_slice %5 {offsets = [0, 3], sizes = [4, 1], strides = [1, 1]} : vector<4x16xf32> to vector<4x1xf32>
    %64 = vector.extract_strided_slice %45 {offsets = [3, 0], sizes = [1, 256], strides = [1, 1]} : vector<16x256xf32> to vector<1x256xf32>
    %65 = vector.broadcast %63 : vector<4x1xf32> to vector<4x256xf32>
    %66 = vector.broadcast %64 : vector<1x256xf32> to vector<4x256xf32>
    %67 = arith.mulf %65, %66 : vector<4x256xf32>
    %68 = arith.addf %62, %67 : vector<4x256xf32>
    %69 = vector.extract_strided_slice %5 {offsets = [0, 4], sizes = [4, 1], strides = [1, 1]} : vector<4x16xf32> to vector<4x1xf32>
    %70 = vector.extract_strided_slice %45 {offsets = [4, 0], sizes = [1, 256], strides = [1, 1]} : vector<16x256xf32> to vector<1x256xf32>
    %71 = vector.broadcast %69 : vector<4x1xf32> to vector<4x256xf32>
    %72 = vector.broadcast %70 : vector<1x256xf32> to vector<4x256xf32>
    %73 = arith.mulf %71, %72 : vector<4x256xf32>
    %74 = arith.addf %68, %73 : vector<4x256xf32>
    %75 = vector.extract_strided_slice %5 {offsets = [0, 5], sizes = [4, 1], strides = [1, 1]} : vector<4x16xf32> to vector<4x1xf32>
    %76 = vector.extract_strided_slice %45 {offsets = [5, 0], sizes = [1, 256], strides = [1, 1]} : vector<16x256xf32> to vector<1x256xf32>
    %77 = vector.broadcast %75 : vector<4x1xf32> to vector<4x256xf32>
    %78 = vector.broadcast %76 : vector<1x256xf32> to vector<4x256xf32>
    %79 = arith.mulf %77, %78 : vector<4x256xf32>
    %80 = arith.addf %74, %79 : vector<4x256xf32>
    %81 = vector.extract_strided_slice %5 {offsets = [0, 6], sizes = [4, 1], strides = [1, 1]} : vector<4x16xf32> to vector<4x1xf32>
    %82 = vector.extract_strided_slice %45 {offsets = [6, 0], sizes = [1, 256], strides = [1, 1]} : vector<16x256xf32> to vector<1x256xf32>
    %83 = vector.broadcast %81 : vector<4x1xf32> to vector<4x256xf32>
    %84 = vector.broadcast %82 : vector<1x256xf32> to vector<4x256xf32>
    %85 = arith.mulf %83, %84 : vector<4x256xf32>
    %86 = arith.addf %80, %85 : vector<4x256xf32>
    %87 = vector.extract_strided_slice %5 {offsets = [0, 7], sizes = [4, 1], strides = [1, 1]} : vector<4x16xf32> to vector<4x1xf32>
    %88 = vector.extract_strided_slice %45 {offsets = [7, 0], sizes = [1, 256], strides = [1, 1]} : vector<16x256xf32> to vector<1x256xf32>
    %89 = vector.broadcast %87 : vector<4x1xf32> to vector<4x256xf32>
    %90 = vector.broadcast %88 : vector<1x256xf32> to vector<4x256xf32>
    %91 = arith.mulf %89, %90 : vector<4x256xf32>
    %92 = arith.addf %86, %91 : vector<4x256xf32>
    %93 = vector.extract_strided_slice %5 {offsets = [0, 8], sizes = [4, 1], strides = [1, 1]} : vector<4x16xf32> to vector<4x1xf32>
    %94 = vector.extract_strided_slice %45 {offsets = [8, 0], sizes = [1, 256], strides = [1, 1]} : vector<16x256xf32> to vector<1x256xf32>
    %95 = vector.broadcast %93 : vector<4x1xf32> to vector<4x256xf32>
    %96 = vector.broadcast %94 : vector<1x256xf32> to vector<4x256xf32>
    %97 = arith.mulf %95, %96 : vector<4x256xf32>
    %98 = arith.addf %92, %97 : vector<4x256xf32>
    %99 = vector.extract_strided_slice %5 {offsets = [0, 9], sizes = [4, 1], strides = [1, 1]} : vector<4x16xf32> to vector<4x1xf32>
    %100 = vector.extract_strided_slice %45 {offsets = [9, 0], sizes = [1, 256], strides = [1, 1]} : vector<16x256xf32> to vector<1x256xf32>
    %101 = vector.broadcast %99 : vector<4x1xf32> to vector<4x256xf32>
    %102 = vector.broadcast %100 : vector<1x256xf32> to vector<4x256xf32>
    %103 = arith.mulf %101, %102 : vector<4x256xf32>
    %104 = arith.addf %98, %103 : vector<4x256xf32>
    %105 = vector.extract_strided_slice %5 {offsets = [0, 10], sizes = [4, 1], strides = [1, 1]} : vector<4x16xf32> to vector<4x1xf32>
    %106 = vector.extract_strided_slice %45 {offsets = [10, 0], sizes = [1, 256], strides = [1, 1]} : vector<16x256xf32> to vector<1x256xf32>
    %107 = vector.broadcast %105 : vector<4x1xf32> to vector<4x256xf32>
    %108 = vector.broadcast %106 : vector<1x256xf32> to vector<4x256xf32>
    %109 = arith.mulf %107, %108 : vector<4x256xf32>
    %110 = arith.addf %104, %109 : vector<4x256xf32>
    %111 = vector.extract_strided_slice %5 {offsets = [0, 11], sizes = [4, 1], strides = [1, 1]} : vector<4x16xf32> to vector<4x1xf32>
    %112 = vector.extract_strided_slice %45 {offsets = [11, 0], sizes = [1, 256], strides = [1, 1]} : vector<16x256xf32> to vector<1x256xf32>
    %113 = vector.broadcast %111 : vector<4x1xf32> to vector<4x256xf32>
    %114 = vector.broadcast %112 : vector<1x256xf32> to vector<4x256xf32>
    %115 = arith.mulf %113, %114 : vector<4x256xf32>
    %116 = arith.addf %110, %115 : vector<4x256xf32>
    %117 = vector.extract_strided_slice %5 {offsets = [0, 12], sizes = [4, 1], strides = [1, 1]} : vector<4x16xf32> to vector<4x1xf32>
    %118 = vector.extract_strided_slice %45 {offsets = [12, 0], sizes = [1, 256], strides = [1, 1]} : vector<16x256xf32> to vector<1x256xf32>
    %119 = vector.broadcast %117 : vector<4x1xf32> to vector<4x256xf32>
    %120 = vector.broadcast %118 : vector<1x256xf32> to vector<4x256xf32>
    %121 = arith.mulf %119, %120 : vector<4x256xf32>
    %122 = arith.addf %116, %121 : vector<4x256xf32>
    %123 = vector.extract_strided_slice %5 {offsets = [0, 13], sizes = [4, 1], strides = [1, 1]} : vector<4x16xf32> to vector<4x1xf32>
    %124 = vector.extract_strided_slice %45 {offsets = [13, 0], sizes = [1, 256], strides = [1, 1]} : vector<16x256xf32> to vector<1x256xf32>
    %125 = vector.broadcast %123 : vector<4x1xf32> to vector<4x256xf32>
    %126 = vector.broadcast %124 : vector<1x256xf32> to vector<4x256xf32>
    %127 = arith.mulf %125, %126 : vector<4x256xf32>
    %128 = arith.addf %122, %127 : vector<4x256xf32>
    %129 = vector.extract_strided_slice %5 {offsets = [0, 14], sizes = [4, 1], strides = [1, 1]} : vector<4x16xf32> to vector<4x1xf32>
    %130 = vector.extract_strided_slice %45 {offsets = [14, 0], sizes = [1, 256], strides = [1, 1]} : vector<16x256xf32> to vector<1x256xf32>
    %131 = vector.broadcast %129 : vector<4x1xf32> to vector<4x256xf32>
    %132 = vector.broadcast %130 : vector<1x256xf32> to vector<4x256xf32>
    %133 = arith.mulf %131, %132 : vector<4x256xf32>
    %134 = arith.addf %128, %133 : vector<4x256xf32>
    %135 = vector.extract_strided_slice %5 {offsets = [0, 15], sizes = [4, 1], strides = [1, 1]} : vector<4x16xf32> to vector<4x1xf32>
    %136 = vector.extract_strided_slice %45 {offsets = [15, 0], sizes = [1, 256], strides = [1, 1]} : vector<16x256xf32> to vector<1x256xf32>
    %137 = vector.broadcast %135 : vector<4x1xf32> to vector<4x256xf32>
    %138 = vector.broadcast %136 : vector<1x256xf32> to vector<4x256xf32>
    %139 = arith.mulf %137, %138 : vector<4x256xf32>
    %140 = arith.addf %134, %139 : vector<4x256xf32>
    %c0_10 = arith.constant 0 : index
    %c0_11 = arith.constant 0 : index
    %c0_12 = arith.constant 0 : index
    %141 = vector.load %arg6[%c0_10, %c0_11, %c0_12] : memref<2x4x256xf32, #tpu.memory_space<vmem>>, vector<1x4x256xf32>
    %142 = vector.shape_cast %141 : vector<1x4x256xf32> to vector<4x256xf32>
    %143 = vector.shape_cast %140 : vector<4x256xf32> to vector<1x4x256xf32>
    tpu.vector_store %arg6[%c0_10, %c0_11, %c0_12], %143 {strides = array<i32>} : memref<2x4x256xf32, #tpu.memory_space<vmem>>, vector<1x4x256xf32>,
    %c0_13 = arith.constant 0 : index
    %c0_14 = arith.constant 0 : index
    %c0_15 = arith.constant 0 : index
    %144 = vector.load %arg7[%c0_13, %c0_14, %c0_15] : memref<2x1x256xi32, #tpu.memory_space<vmem>>, vector<1x1x256xi32>
    %145 = vector.shape_cast %144 : vector<1x1x256xi32> to vector<1x256xi32>
    %146 = vector.shape_cast %41 : vector<1x256xi32> to vector<1x1x256xi32>
    tpu.vector_store %arg7[%c0_13, %c0_14, %c0_15], %146 {strides = array<i32>} : memref<2x1x256xi32, #tpu.memory_space<vmem>>, vector<1x1x256xi32>,
    %c0_16 = arith.constant 0 : index
    %c0_17 = arith.constant 0 : index
    %c0_18 = arith.constant 0 : index
    %147 = vector.load %arg8[%c0_16, %c0_17, %c0_18] : memref<1x16x1xf32, #tpu.memory_space<vmem>>, vector<1x16x1xf32>
    %148 = vector.shape_cast %147 : vector<1x16x1xf32> to vector<16x1xf32>
    %cst_19 = arith.constant dense<0.000000e+00> : vector<16xf32>
    %149 = vector.multi_reduction <add>, %45, %cst_19 [1] : vector<16x256xf32> to vector<16xf32>
    %150 = vector.shape_cast %149 : vector<16xf32> to vector<16x1xf32>
    %151 = arith.addf %148, %150 : vector<16x1xf32>
    %c0_20 = arith.constant 0 : index
    %c0_21 = arith.constant 0 : index
    %c0_22 = arith.constant 0 : index
    %152 = vector.load %arg8[%c0_20, %c0_21, %c0_22] : memref<1x16x1xf32, #tpu.memory_space<vmem>>, vector<1x16x1xf32>
    %153 = vector.shape_cast %152 : vector<1x16x1xf32> to vector<16x1xf32>
    %154 = vector.shape_cast %151 : vector<16x1xf32> to vector<1x16x1xf32>
    tpu.vector_store %arg8[%c0_20, %c0_21, %c0_22], %154 {strides = array<i32>} : memref<1x16x1xf32, #tpu.memory_space<vmem>>, vector<1x16x1xf32>,
    %155 = arith.subf %140, %8 : vector<4x256xf32>
    %156 = arith.mulf %155, %155 : vector<4x256xf32>
    %c0_23 = arith.constant 0 : index
    %c0_24 = arith.constant 0 : index
    %c0_25 = arith.constant 0 : index
    %157 = vector.load %arg9[%c0_23, %c0_24, %c0_25] : memref<1x1x1xf32, #tpu.memory_space<vmem>>, vector<1x1x1xf32>
    %158 = vector.shape_cast %157 : vector<1x1x1xf32> to vector<1x1xf32>
    %159 = vector.shape_cast %156 : vector<4x256xf32> to vector<1x4x256xf32>
    %cst_26 = arith.constant dense<0.000000e+00> : vector<1xf32>
    %160 = vector.multi_reduction <add>, %159, %cst_26 [1, 2] : vector<1x4x256xf32> to vector<1xf32>
    %161 = vector.shape_cast %160 : vector<1xf32> to vector<1x1x1xf32>
    %162 = vector.extract %161[0, 0, 0] : f32 from vector<1x1x1xf32>
    %163 = vector.broadcast %162 : f32 to vector<1x1xf32>
    %164 = arith.addf %158, %163 : vector<1x1xf32>
    %c0_27 = arith.constant 0 : index
    %c0_28 = arith.constant 0 : index
    %c0_29 = arith.constant 0 : index
    %165 = vector.load %arg9[%c0_27, %c0_28, %c0_29] : memref<1x1x1xf32, #tpu.memory_space<vmem>>, vector<1x1x1xf32>
    %166 = vector.shape_cast %165 : vector<1x1x1xf32> to vector<1x1xf32>
    %167 = vector.shape_cast %164 : vector<1x1xf32> to vector<1x1x1xf32>
    tpu.vector_store %arg9[%c0_27, %c0_28, %c0_29], %167 {strides = array<i32>} : memref<1x1x1xf32, #tpu.memory_space<vmem>>, vector<1x1x1xf32>,
    %c1 = arith.constant 1 : index
    %c0_30 = arith.constant 0 : index
    %c0_31 = arith.constant 0 : index
    %168 = vector.load %arg2[%c1, %c0_30, %c0_31] : memref<2x4x256xf32, #tpu.memory_space<vmem>>, vector<1x4x256xf32>
    %169 = vector.shape_cast %168 : vector<1x4x256xf32> to vector<4x256xf32>
    %170 = vector.extract_strided_slice %3 {offsets = [0, 0], sizes = [16, 1], strides = [1, 1]} : vector<16x4xf32> to vector<16x1xf32>
    %171 = vector.extract_strided_slice %169 {offsets = [0, 0], sizes = [1, 256], strides = [1, 1]} : vector<4x256xf32> to vector<1x256xf32>
    %172 = vector.broadcast %170 : vector<16x1xf32> to vector<16x256xf32>
    %173 = vector.broadcast %171 : vector<1x256xf32> to vector<16x256xf32>
    %174 = arith.mulf %172, %173 : vector<16x256xf32>
    %175 = vector.broadcast %4 : vector<16x1xf32> to vector<16x256xf32>
    %176 = arith.addf %175, %174 : vector<16x256xf32>
    %177 = vector.extract_strided_slice %3 {offsets = [0, 1], sizes = [16, 1], strides = [1, 1]} : vector<16x4xf32> to vector<16x1xf32>
    %178 = vector.extract_strided_slice %169 {offsets = [1, 0], sizes = [1, 256], strides = [1, 1]} : vector<4x256xf32> to vector<1x256xf32>
    %179 = vector.broadcast %177 : vector<16x1xf32> to vector<16x256xf32>
    %180 = vector.broadcast %178 : vector<1x256xf32> to vector<16x256xf32>
    %181 = arith.mulf %179, %180 : vector<16x256xf32>
    %182 = arith.addf %176, %181 : vector<16x256xf32>
    %183 = vector.extract_strided_slice %3 {offsets = [0, 2], sizes = [16, 1], strides = [1, 1]} : vector<16x4xf32> to vector<16x1xf32>
    %184 = vector.extract_strided_slice %169 {offsets = [2, 0], sizes = [1, 256], strides = [1, 1]} : vector<4x256xf32> to vector<1x256xf32>
    %185 = vector.broadcast %183 : vector<16x1xf32> to vector<16x256xf32>
    %186 = vector.broadcast %184 : vector<1x256xf32> to vector<16x256xf32>
    %187 = arith.mulf %185, %186 : vector<16x256xf32>
    %188 = arith.addf %182, %187 : vector<16x256xf32>
    %189 = vector.extract_strided_slice %3 {offsets = [0, 3], sizes = [16, 1], strides = [1, 1]} : vector<16x4xf32> to vector<16x1xf32>
    %190 = vector.extract_strided_slice %169 {offsets = [3, 0], sizes = [1, 256], strides = [1, 1]} : vector<4x256xf32> to vector<1x256xf32>
    %191 = vector.broadcast %189 : vector<16x1xf32> to vector<16x256xf32>
    %192 = vector.broadcast %190 : vector<1x256xf32> to vector<16x256xf32>
    %193 = arith.mulf %191, %192 : vector<16x256xf32>
    %194 = arith.addf %188, %193 : vector<16x256xf32>
    %cst_32 = arith.constant dense<0x7F800000> : vector<256xf32>
    %195 = vector.multi_reduction <minimumf>, %194, %cst_32 [0] : vector<16x256xf32> to vector<256xf32>
    %196 = vector.shape_cast %195 : vector<256xf32> to vector<1x256xf32>
    %197 = vector.broadcast %196 : vector<1x256xf32> to vector<16x256xf32>
    %198 = arith.cmpf oeq, %194, %197 : vector<16x256xf32>
    %c16_i32_33 = arith.constant 16 : i32
    %199 = vector.broadcast %c16_i32_33 : i32 to vector<16x256xi32>
    %200 = arith.select %198, %6, %199 : vector<16x256xi1>, vector<16x256xi32>
    %cst_34 = arith.constant dense<2147483647> : vector<256xi32>
    %201 = vector.multi_reduction <minsi>, %200, %cst_34 [0] : vector<16x256xi32> to vector<256xi32>
    %202 = vector.shape_cast %201 : vector<256xi32> to vector<1x256xi32>
    %203 = vector.broadcast %202 : vector<1x256xi32> to vector<16x256xi32>
    %204 = arith.cmpi eq, %6, %203 : vector<16x256xi32>
    %205 = arith.extui %204 : vector<16x256xi1> to vector<16x256xi32>
    %206 = arith.sitofp %205 : vector<16x256xi32> to vector<16x256xf32>
    %207 = vector.extract_strided_slice %5 {offsets = [0, 0], sizes = [4, 1], strides = [1, 1]} : vector<4x16xf32> to vector<4x1xf32>
    %208 = vector.extract_strided_slice %206 {offsets = [0, 0], sizes = [1, 256], strides = [1, 1]} : vector<16x256xf32> to vector<1x256xf32>
    %209 = vector.broadcast %207 : vector<4x1xf32> to vector<4x256xf32>
    %210 = vector.broadcast %208 : vector<1x256xf32> to vector<4x256xf32>
    %211 = arith.mulf %209, %210 : vector<4x256xf32>
    %212 = vector.extract_strided_slice %5 {offsets = [0, 1], sizes = [4, 1], strides = [1, 1]} : vector<4x16xf32> to vector<4x1xf32>
    %213 = vector.extract_strided_slice %206 {offsets = [1, 0], sizes = [1, 256], strides = [1, 1]} : vector<16x256xf32> to vector<1x256xf32>
    %214 = vector.broadcast %212 : vector<4x1xf32> to vector<4x256xf32>
    %215 = vector.broadcast %213 : vector<1x256xf32> to vector<4x256xf32>
    %216 = arith.mulf %214, %215 : vector<4x256xf32>
    %217 = arith.addf %211, %216 : vector<4x256xf32>
    %218 = vector.extract_strided_slice %5 {offsets = [0, 2], sizes = [4, 1], strides = [1, 1]} : vector<4x16xf32> to vector<4x1xf32>
    %219 = vector.extract_strided_slice %206 {offsets = [2, 0], sizes = [1, 256], strides = [1, 1]} : vector<16x256xf32> to vector<1x256xf32>
    %220 = vector.broadcast %218 : vector<4x1xf32> to vector<4x256xf32>
    %221 = vector.broadcast %219 : vector<1x256xf32> to vector<4x256xf32>
    %222 = arith.mulf %220, %221 : vector<4x256xf32>
    %223 = arith.addf %217, %222 : vector<4x256xf32>
    %224 = vector.extract_strided_slice %5 {offsets = [0, 3], sizes = [4, 1], strides = [1, 1]} : vector<4x16xf32> to vector<4x1xf32>
    %225 = vector.extract_strided_slice %206 {offsets = [3, 0], sizes = [1, 256], strides = [1, 1]} : vector<16x256xf32> to vector<1x256xf32>
    %226 = vector.broadcast %224 : vector<4x1xf32> to vector<4x256xf32>
    %227 = vector.broadcast %225 : vector<1x256xf32> to vector<4x256xf32>
    %228 = arith.mulf %226, %227 : vector<4x256xf32>
    %229 = arith.addf %223, %228 : vector<4x256xf32>
    %230 = vector.extract_strided_slice %5 {offsets = [0, 4], sizes = [4, 1], strides = [1, 1]} : vector<4x16xf32> to vector<4x1xf32>
    %231 = vector.extract_strided_slice %206 {offsets = [4, 0], sizes = [1, 256], strides = [1, 1]} : vector<16x256xf32> to vector<1x256xf32>
    %232 = vector.broadcast %230 : vector<4x1xf32> to vector<4x256xf32>
    %233 = vector.broadcast %231 : vector<1x256xf32> to vector<4x256xf32>
    %234 = arith.mulf %232, %233 : vector<4x256xf32>
    %235 = arith.addf %229, %234 : vector<4x256xf32>
    %236 = vector.extract_strided_slice %5 {offsets = [0, 5], sizes = [4, 1], strides = [1, 1]} : vector<4x16xf32> to vector<4x1xf32>
    %237 = vector.extract_strided_slice %206 {offsets = [5, 0], sizes = [1, 256], strides = [1, 1]} : vector<16x256xf32> to vector<1x256xf32>
    %238 = vector.broadcast %236 : vector<4x1xf32> to vector<4x256xf32>
    %239 = vector.broadcast %237 : vector<1x256xf32> to vector<4x256xf32>
    %240 = arith.mulf %238, %239 : vector<4x256xf32>
    %241 = arith.addf %235, %240 : vector<4x256xf32>
    %242 = vector.extract_strided_slice %5 {offsets = [0, 6], sizes = [4, 1], strides = [1, 1]} : vector<4x16xf32> to vector<4x1xf32>
    %243 = vector.extract_strided_slice %206 {offsets = [6, 0], sizes = [1, 256], strides = [1, 1]} : vector<16x256xf32> to vector<1x256xf32>
    %244 = vector.broadcast %242 : vector<4x1xf32> to vector<4x256xf32>
    %245 = vector.broadcast %243 : vector<1x256xf32> to vector<4x256xf32>
    %246 = arith.mulf %244, %245 : vector<4x256xf32>
    %247 = arith.addf %241, %246 : vector<4x256xf32>
    %248 = vector.extract_strided_slice %5 {offsets = [0, 7], sizes = [4, 1], strides = [1, 1]} : vector<4x16xf32> to vector<4x1xf32>
    %249 = vector.extract_strided_slice %206 {offsets = [7, 0], sizes = [1, 256], strides = [1, 1]} : vector<16x256xf32> to vector<1x256xf32>
    %250 = vector.broadcast %248 : vector<4x1xf32> to vector<4x256xf32>
    %251 = vector.broadcast %249 : vector<1x256xf32> to vector<4x256xf32>
    %252 = arith.mulf %250, %251 : vector<4x256xf32>
    %253 = arith.addf %247, %252 : vector<4x256xf32>
    %254 = vector.extract_strided_slice %5 {offsets = [0, 8], sizes = [4, 1], strides = [1, 1]} : vector<4x16xf32> to vector<4x1xf32>
    %255 = vector.extract_strided_slice %206 {offsets = [8, 0], sizes = [1, 256], strides = [1, 1]} : vector<16x256xf32> to vector<1x256xf32>
    %256 = vector.broadcast %254 : vector<4x1xf32> to vector<4x256xf32>
    %257 = vector.broadcast %255 : vector<1x256xf32> to vector<4x256xf32>
    %258 = arith.mulf %256, %257 : vector<4x256xf32>
    %259 = arith.addf %253, %258 : vector<4x256xf32>
    %260 = vector.extract_strided_slice %5 {offsets = [0, 9], sizes = [4, 1], strides = [1, 1]} : vector<4x16xf32> to vector<4x1xf32>
    %261 = vector.extract_strided_slice %206 {offsets = [9, 0], sizes = [1, 256], strides = [1, 1]} : vector<16x256xf32> to vector<1x256xf32>
    %262 = vector.broadcast %260 : vector<4x1xf32> to vector<4x256xf32>
    %263 = vector.broadcast %261 : vector<1x256xf32> to vector<4x256xf32>
    %264 = arith.mulf %262, %263 : vector<4x256xf32>
    %265 = arith.addf %259, %264 : vector<4x256xf32>
    %266 = vector.extract_strided_slice %5 {offsets = [0, 10], sizes = [4, 1], strides = [1, 1]} : vector<4x16xf32> to vector<4x1xf32>
    %267 = vector.extract_strided_slice %206 {offsets = [10, 0], sizes = [1, 256], strides = [1, 1]} : vector<16x256xf32> to vector<1x256xf32>
    %268 = vector.broadcast %266 : vector<4x1xf32> to vector<4x256xf32>
    %269 = vector.broadcast %267 : vector<1x256xf32> to vector<4x256xf32>
    %270 = arith.mulf %268, %269 : vector<4x256xf32>
    %271 = arith.addf %265, %270 : vector<4x256xf32>
    %272 = vector.extract_strided_slice %5 {offsets = [0, 11], sizes = [4, 1], strides = [1, 1]} : vector<4x16xf32> to vector<4x1xf32>
    %273 = vector.extract_strided_slice %206 {offsets = [11, 0], sizes = [1, 256], strides = [1, 1]} : vector<16x256xf32> to vector<1x256xf32>
    %274 = vector.broadcast %272 : vector<4x1xf32> to vector<4x256xf32>
    %275 = vector.broadcast %273 : vector<1x256xf32> to vector<4x256xf32>
    %276 = arith.mulf %274, %275 : vector<4x256xf32>
    %277 = arith.addf %271, %276 : vector<4x256xf32>
    %278 = vector.extract_strided_slice %5 {offsets = [0, 12], sizes = [4, 1], strides = [1, 1]} : vector<4x16xf32> to vector<4x1xf32>
    %279 = vector.extract_strided_slice %206 {offsets = [12, 0], sizes = [1, 256], strides = [1, 1]} : vector<16x256xf32> to vector<1x256xf32>
    %280 = vector.broadcast %278 : vector<4x1xf32> to vector<4x256xf32>
    %281 = vector.broadcast %279 : vector<1x256xf32> to vector<4x256xf32>
    %282 = arith.mulf %280, %281 : vector<4x256xf32>
    %283 = arith.addf %277, %282 : vector<4x256xf32>
    %284 = vector.extract_strided_slice %5 {offsets = [0, 13], sizes = [4, 1], strides = [1, 1]} : vector<4x16xf32> to vector<4x1xf32>
    %285 = vector.extract_strided_slice %206 {offsets = [13, 0], sizes = [1, 256], strides = [1, 1]} : vector<16x256xf32> to vector<1x256xf32>
    %286 = vector.broadcast %284 : vector<4x1xf32> to vector<4x256xf32>
    %287 = vector.broadcast %285 : vector<1x256xf32> to vector<4x256xf32>
    %288 = arith.mulf %286, %287 : vector<4x256xf32>
    %289 = arith.addf %283, %288 : vector<4x256xf32>
    %290 = vector.extract_strided_slice %5 {offsets = [0, 14], sizes = [4, 1], strides = [1, 1]} : vector<4x16xf32> to vector<4x1xf32>
    %291 = vector.extract_strided_slice %206 {offsets = [14, 0], sizes = [1, 256], strides = [1, 1]} : vector<16x256xf32> to vector<1x256xf32>
    %292 = vector.broadcast %290 : vector<4x1xf32> to vector<4x256xf32>
    %293 = vector.broadcast %291 : vector<1x256xf32> to vector<4x256xf32>
    %294 = arith.mulf %292, %293 : vector<4x256xf32>
    %295 = arith.addf %289, %294 : vector<4x256xf32>
    %296 = vector.extract_strided_slice %5 {offsets = [0, 15], sizes = [4, 1], strides = [1, 1]} : vector<4x16xf32> to vector<4x1xf32>
    %297 = vector.extract_strided_slice %206 {offsets = [15, 0], sizes = [1, 256], strides = [1, 1]} : vector<16x256xf32> to vector<1x256xf32>
    %298 = vector.broadcast %296 : vector<4x1xf32> to vector<4x256xf32>
    %299 = vector.broadcast %297 : vector<1x256xf32> to vector<4x256xf32>
    %300 = arith.mulf %298, %299 : vector<4x256xf32>
    %301 = arith.addf %295, %300 : vector<4x256xf32>
    %c1_35 = arith.constant 1 : index
    %c0_36 = arith.constant 0 : index
    %c0_37 = arith.constant 0 : index
    %302 = vector.load %arg6[%c1_35, %c0_36, %c0_37] : memref<2x4x256xf32, #tpu.memory_space<vmem>>, vector<1x4x256xf32>
    %303 = vector.shape_cast %302 : vector<1x4x256xf32> to vector<4x256xf32>
    %304 = vector.shape_cast %301 : vector<4x256xf32> to vector<1x4x256xf32>
    tpu.vector_store %arg6[%c1_35, %c0_36, %c0_37], %304 {strides = array<i32>} : memref<2x4x256xf32, #tpu.memory_space<vmem>>, vector<1x4x256xf32>,
    %c1_38 = arith.constant 1 : index
    %c0_39 = arith.constant 0 : index
    %c0_40 = arith.constant 0 : index
    %305 = vector.load %arg7[%c1_38, %c0_39, %c0_40] : memref<2x1x256xi32, #tpu.memory_space<vmem>>, vector<1x1x256xi32>
    %306 = vector.shape_cast %305 : vector<1x1x256xi32> to vector<1x256xi32>
    %307 = vector.shape_cast %202 : vector<1x256xi32> to vector<1x1x256xi32>
    tpu.vector_store %arg7[%c1_38, %c0_39, %c0_40], %307 {strides = array<i32>} : memref<2x1x256xi32, #tpu.memory_space<vmem>>, vector<1x1x256xi32>,
    %c0_41 = arith.constant 0 : index
    %c0_42 = arith.constant 0 : index
    %c0_43 = arith.constant 0 : index
    %308 = vector.load %arg8[%c0_41, %c0_42, %c0_43] : memref<1x16x1xf32, #tpu.memory_space<vmem>>, vector<1x16x1xf32>
    %309 = vector.shape_cast %308 : vector<1x16x1xf32> to vector<16x1xf32>
    %cst_44 = arith.constant dense<0.000000e+00> : vector<16xf32>
    %310 = vector.multi_reduction <add>, %206, %cst_44 [1] : vector<16x256xf32> to vector<16xf32>
    %311 = vector.shape_cast %310 : vector<16xf32> to vector<16x1xf32>
    %312 = arith.addf %309, %311 : vector<16x1xf32>
    %c0_45 = arith.constant 0 : index
    %c0_46 = arith.constant 0 : index
    %c0_47 = arith.constant 0 : index
    %313 = vector.load %arg8[%c0_45, %c0_46, %c0_47] : memref<1x16x1xf32, #tpu.memory_space<vmem>>, vector<1x16x1xf32>
    %314 = vector.shape_cast %313 : vector<1x16x1xf32> to vector<16x1xf32>
    %315 = vector.shape_cast %312 : vector<16x1xf32> to vector<1x16x1xf32>
    tpu.vector_store %arg8[%c0_45, %c0_46, %c0_47], %315 {strides = array<i32>} : memref<1x16x1xf32, #tpu.memory_space<vmem>>, vector<1x16x1xf32>,
    %316 = arith.subf %301, %169 : vector<4x256xf32>
    %317 = arith.mulf %316, %316 : vector<4x256xf32>
    %c0_48 = arith.constant 0 : index
    %c0_49 = arith.constant 0 : index
    %c0_50 = arith.constant 0 : index
    %318 = vector.load %arg9[%c0_48, %c0_49, %c0_50] : memref<1x1x1xf32, #tpu.memory_space<vmem>>, vector<1x1x1xf32>
    %319 = vector.shape_cast %318 : vector<1x1x1xf32> to vector<1x1xf32>
    %320 = vector.shape_cast %317 : vector<4x256xf32> to vector<1x4x256xf32>
    %cst_51 = arith.constant dense<0.000000e+00> : vector<1xf32>
    %321 = vector.multi_reduction <add>, %320, %cst_51 [1, 2] : vector<1x4x256xf32> to vector<1xf32>
    %322 = vector.shape_cast %321 : vector<1xf32> to vector<1x1x1xf32>
    %323 = vector.extract %322[0, 0, 0] : f32 from vector<1x1x1xf32>
    %324 = vector.broadcast %323 : f32 to vector<1x1xf32>
    %325 = arith.addf %319, %324 : vector<1x1xf32>
    %c0_52 = arith.constant 0 : index
    %c0_53 = arith.constant 0 : index
    %c0_54 = arith.constant 0 : index
    %326 = vector.load %arg9[%c0_52, %c0_53, %c0_54] : memref<1x1x1xf32, #tpu.memory_space<vmem>>, vector<1x1x1xf32>
    %327 = vector.shape_cast %326 : vector<1x1x1xf32> to vector<1x1xf32>
    %328 = vector.shape_cast %325 : vector<1x1xf32> to vector<1x1x1xf32>
    tpu.vector_store %arg9[%c0_52, %c0_53, %c0_54], %328 {strides = array<i32>} : memref<1x1x1xf32, #tpu.memory_space<vmem>>, vector<1x1x1xf32>,
    return
  }
  func.func @transform_0(%arg0: i32, %arg1: i32) -> (i32, i32, i32) {
    %c0_i32 = arith.constant 0 : i32
    %c0_i32_0 = arith.constant 0 : i32
    return %arg0, %c0_i32, %arg1 : i32, i32, i32
  }
  func.func @transform_1(%arg0: i32, %arg1: i32) -> (i32, i32) {
    %c0_i32 = arith.constant 0 : i32
    %c0_i32_0 = arith.constant 0 : i32
    %c0_i32_1 = arith.constant 0 : i32
    return %c0_i32, %c0_i32_0 : i32, i32
  }
  func.func @transform_2(%arg0: i32, %arg1: i32) -> (i32, i32) {
    %c0_i32 = arith.constant 0 : i32
    %c0_i32_0 = arith.constant 0 : i32
    %c0_i32_1 = arith.constant 0 : i32
    return %c0_i32, %c0_i32_0 : i32, i32
  }
  func.func @transform_3(%arg0: i32, %arg1: i32) -> (i32, i32) {
    %c0_i32 = arith.constant 0 : i32
    %c0_i32_0 = arith.constant 0 : i32
    %c0_i32_1 = arith.constant 0 : i32
    return %c0_i32, %c0_i32_0 : i32, i32
  }
  func.func @transform_4(%arg0: i32, %arg1: i32) -> (i32, i32, i32) {
    %c0_i32 = arith.constant 0 : i32
    %c0_i32_0 = arith.constant 0 : i32
    return %arg0, %c0_i32, %arg1 : i32, i32, i32
  }
  func.func @transform_5(%arg0: i32, %arg1: i32) -> (i32, i32, i32) {
    %c0_i32 = arith.constant 0 : i32
    %c0_i32_0 = arith.constant 0 : i32
    return %arg0, %c0_i32, %arg1 : i32, i32, i32
  }
  func.func @transform_6(%arg0: i32, %arg1: i32) -> (i32, i32, i32) {
    %c0_i32 = arith.constant 0 : i32
    %c0_i32_0 = arith.constant 0 : i32
    %c0_i32_1 = arith.constant 0 : i32
    return %arg0, %c0_i32, %c0_i32_0 : i32, i32, i32
  }
  func.func @transform_7(%arg0: i32, %arg1: i32) -> (i32, i32, i32) {
    %c0_i32 = arith.constant 0 : i32
    %c0_i32_0 = arith.constant 0 : i32
    %c0_i32_1 = arith.constant 0 : i32
    return %arg0, %c0_i32, %c0_i32_0 : i32, i32, i32
  }
}

</mosaic_0001>

<bundles_post_ra>
// kernel: tpu_custom_call.1
= control target key start
LH: loop header
LB: loop body
LE: loop exit
PB: predicated region body
PF: predicated region fallthrough
CT: control target
= control target key end

     0   :  { %13 = vsyncpa [#allocation3], 0  ;;  %v1155_v2 = vmov 0   ;;  %s1632_s0 = inlined_call_operand.vmem [shape: f32[2,4,256], index: 0, kind: input, shape index: {}]   ;;  %s1633_s1 = inlined_call_operand.vmem [shape: f32[16,4], index: 1, kind: input, shape index: {}]   ;;  %s1634_s2 = inlined_call_operand.vmem [shape: f32[16,1], index: 2, kind: input, shape index: {}]   ;;  %s1635_s3 = inlined_call_operand.vmem [shape: f32[4,16], index: 3, kind: input, shape index: {}]   ;;  %s1636_s4 = inlined_call_operand.hbm [shape: f32[2,4,256], index: 4, kind: output, shape index: {0}]   ;;  %s1637_s5 = inlined_call_operand.hbm [shape: s32[2,1,256], index: 5, kind: output, shape index: {1}]   ;;  %s1638_s6 = inlined_call_operand.vmem [shape: f32[1,16,1], index: 6, kind: output, shape index: {2}]   ;;  %s1639_s7 = inlined_call_operand.hbm [shape: f32[1,1,1], index: 7, kind: output, shape index: {3}]  }
   0x1   :  { %v34_v0 = vld [vmem:[%s1634_s2] sm:$0xff]  ;;  %1061 = vset.pattern.permute.xlu1 %v1155_v2  ;;  %1060 = vset.pattern.permute.xlu0 %v1155_v2  ;;  %v35_v3 = vld [vmem:[%s1634_s2 + $0x8] sm:$0xff] }
   0x2   :  { %v32_v1 = vld [vmem:[%s1633_s1] sm:$0xff]  ;;  %76 = vperm.xlu1 %1061, %v34_v0   ;;  %v33_v4 = vld [vmem:[%s1633_s1 + $0x8] sm:$0xff] }
   0x3   :  { %43 = vperm.xlu0 %1060, %v32_v1  }
   0x4   :  { %14 = vsyncpa [#allocation5], 0  ;;  %v1156_v5 = vmov 1   ;;  %v1157_v6 = vmov 2   ;;  %v1158_v7 = vmov 3   ;;  %v1159_v9 = vmov 6  }
   0x5   :  { %v36_v8 = vld [vmem:[%s1635_s3] sm:$0xf]  ;;  %v1160_v10 = vmov 9   ;;  %v1161_v11 = vmov 4   ;;  %v1162_v12 = vmov 12   ;;  %v1163_v13 = vmov 5  }
   0x6   :  { %81 = vperm.xlu1 %1061, %v35_v3   ;;  %v1164_v14 = vmov 15   ;;  %v1165_v15 = vmov 7   ;;  %v1166_v16 = vmov 8   ;;  %v1167_v17 = vmov 10   ;;  %v1247_v25 = vld [vmem:[%s1632_s0] sm:$0xff]  ;;  %v1252_v26 = vld [vmem:[%s1632_s0 + $0x8] sm:$0xff] }
   0x7   :  { %48 = vperm.xlu0 %1060, %v33_v4   ;;  %v1168_v18 = vmov 11   ;;  %v1169_v19 = vmov 13   ;;  %v1170_v20 = vmov 14   ;;  %v37_v21 = vlaneseq  ;;  %s1173_s15 = smov [#allocation4]  }
   0x8   :  { %s990_s16 = sshll.u32 %s1173_s15, 4  ;;  %s991_s16 = int_to_ptr.vmem [resolvable:$true] %s990_s16 }
   0x9   :  { %v1236_v22 = vshrl.u32 %v37_v21, 7  ;;  %s1085_s17 = scalar_lea.vmem %s991_s16, 64  ;;  %p1090_p1 = scmp.lt.s32.totalorder %s991_s16, %s991_s16 }
   0xa   :  { %1063 = vset.pattern.permute.xlu1 %v1156_v5  ;;  %p1086_p0 = scmp.ne.s32.totalorder %s991_s16, %s1085_s17  ;;  %p1091_p2 = scmp.lt.s32.totalorder %s1085_s17, %s1085_s17 }
   0xb   :  { %1062 = vset.pattern.permute.xlu0 %v1156_v5  ;;  %93 = vperm.xlu1 %1063, %v33_v4   ;;  %v1239_v23 = vsub.s32 0, %v1236_v22  ;;  %v1242_v24 = vsub.s32 4, %v1236_v22  ;;  %v1255_v27 = vsub.s32 1, %v1236_v22  ;;  %v1258_v28 = vsub.s32 5, %v1236_v22 }
   0xc   :  { %89 = vperm.xlu0 %1062, %v32_v1   ;;  %v1261_v31 = vsub.s32 2, %v1236_v22  ;;  %v1264_v32 = vsub.s32 6, %v1236_v22  ;;  %v1283_v43 = vsub.s32 3, %v1236_v22  ;;  %v1286_v44 = vsub.s32 7, %v1236_v22  ;;  %p1092_p3 = por %p1091_p2, %p1090_p1 }
   0xd   :  { %v55_v33 = vrot.slane %v1247_v25, %v1239_v23  ;;  %v59_v34 = vrot.slane %v1247_v25, %v1242_v24  ;;  %v569_v35 = vrot.slane %v1252_v26, %v1239_v23  ;;  %v573_v36 = vrot.slane %v1252_v26, %v1242_v24 }
   0xe   :  { %v99_v37 = vrot.slane %v1247_v25, %v1255_v27  ;;  %v103_v38 = vrot.slane %v1247_v25, %v1258_v28  ;;  %v595_v39 = vrot.slane %v1252_v26, %v1255_v27  ;;  %v599_v40 = vrot.slane %v1252_v26, %v1258_v28  ;;  %p1093_p4 = pnand %p1092_p3, %p1086_p0 }
   0xf   :  { %1064 = vset.pattern.permute.xlu1 %v1157_v6  ;;  %v133_v45 = vrot.slane %v1247_v25, %v1261_v31  ;;  %v137_v46 = vrot.slane %v1247_v25, %v1264_v32  ;;  %v621_v47 = vrot.slane %v1252_v26, %v1261_v31  ;;  %v625_v48 = vrot.slane %v1252_v26, %v1264_v32 }
  0x10   :  { %1065 = vset.pattern.permute.xlu0 %v1157_v6  ;;  %123 = vperm.xlu1 %1064, %v32_v1   ;;  %v65_v49 = vrot.slane %v55_v33, %v1239_v23  ;;  %v69_v50 = vrot.slane %v59_v34, %v1239_v23  ;;  %v579_v51 = vrot.slane %v569_v35, %v1239_v23 }
  0x11   :  { %127 = vperm.xlu0 %1065, %v33_v4   ;;  %v583_v52 = vrot.slane %v573_v36, %v1239_v23  ;;  %v109_v53 = vrot.slane %v99_v37, %v1255_v27  ;;  %v113_v54 = vrot.slane %v103_v38, %v1255_v27  ;;  %v605_v55 = vrot.slane %v595_v39, %v1255_v27 }
  0x12   :  { %v609_v56 = vrot.slane %v599_v40, %v1255_v27  ;;  %v167_v57 = vrot.slane %v1247_v25, %v1283_v43  ;;  %v171_v58 = vrot.slane %v1247_v25, %v1286_v44  ;;  %v647_v59 = vrot.slane %v1252_v26, %v1283_v43 }
  0x13   :  { %v651_v60 = vrot.slane %v1252_v26, %v1286_v44  ;;  %v143_v62 = vrot.slane %v133_v45, %v1261_v31  ;;  %v147_v63 = vrot.slane %v137_v46, %v1261_v31  ;;  %v631_v0 = vrot.slane %v621_v47, %v1261_v31 }
  0x14   :  { %1066 = vset.pattern.permute.xlu1 %v1158_v7 }
  0x15   :  { %1067 = vset.pattern.permute.xlu0 %v1155_v2  ;;  %157 = vperm.xlu1 %1066, %v32_v1   ;;  %v635_v1 = vrot.slane %v625_v48, %v1261_v31 }
  0x16   :  { %248 = vperm.xlu0 %1067, %v36_v8  }
  0x19   :  { %161 = vperm.xlu1 %1066, %v33_v4  }
  0x1a   :  { %1070 = vset.pattern.permute.xlu0 %v1158_v7 }
  0x1b   :  { %294 = vperm.xlu0 %1070, %v36_v8  }
  0x1d   :  { %1068 = vset.pattern.permute.xlu1 %v1156_v5 }
  0x1e   :  { %262 = vperm.xlu1 %1068, %v36_v8  }
  0x1f   :  { %1073 = vset.pattern.permute.xlu0 %v1159_v9 }
  0x20   :  { %342 = vperm.xlu0 %1073, %v36_v8  }
  0x22   :  { %1069 = vset.pattern.permute.xlu1 %v1157_v6 }
  0x23   :  { %278 = vperm.xlu1 %1069, %v36_v8  }
  0x24   :  { %1076 = vset.pattern.permute.xlu0 %v1160_v10 }
  0x25   :  { %390 = vperm.xlu0 %1076, %v36_v8  }
  0x27   :  { %1071 = vset.pattern.permute.xlu1 %v1161_v11  ;;  %v177_v11 = vrot.slane %v167_v57, %v1283_v43 }
  0x28   :  { %310 = vperm.xlu1 %1071, %v36_v8  }
  0x29   :  { %1079 = vset.pattern.permute.xlu0 %v1162_v12  ;;  %v181_v12 = vrot.slane %v171_v58, %v1283_v43 }
  0x2a   :  { %438 = vperm.xlu0 %1079, %v36_v8  }
  0x2c   :  { %1072 = vset.pattern.permute.xlu1 %v1163_v13  ;;  %v657_v13 = vrot.slane %v647_v59, %v1283_v43 }
  0x2d   :  { %326 = vperm.xlu1 %1072, %v36_v8  }
  0x2e   :  { %1082 = vset.pattern.permute.xlu0 %v1164_v14  ;;  %v661_v14 = vrot.slane %v651_v60, %v1283_v43 }
  0x2f   :  { %486 = vperm.xlu0 %1082, %v36_v8  }
  0x31   :  { %1074 = vset.pattern.permute.xlu1 %v1165_v15 }
  0x32   :  { %358 = vperm.xlu1 %1074, %v36_v8  }
  0x36   :  { %1075 = vset.pattern.permute.xlu1 %v1166_v16 }
  0x37   :  { %374 = vperm.xlu1 %1075, %v36_v8  }
  0x3b   :  { %1077 = vset.pattern.permute.xlu1 %v1167_v17 }
  0x3c   :  { %406 = vperm.xlu1 %1077, %v36_v8  }
  0x40   :  { %1078 = vset.pattern.permute.xlu1 %v1168_v18 }
  0x41   :  { %422 = vperm.xlu1 %1078, %v36_v8  }
  0x45   :  { %1080 = vset.pattern.permute.xlu1 %v1169_v19 }
  0x46   :  { %454 = vperm.xlu1 %1080, %v36_v8  }
  0x4a   :  { %1081 = vset.pattern.permute.xlu1 %v1170_v20 }
  0x4b   :  { %470 = vperm.xlu1 %1081, %v36_v8  }
  0x81   :  { %v77_v29 = vpop.permute.xlu1 %76 }
  0x82   :  { %v44_v30 = vpop.permute.xlu0 %43 }
  0x83   :  { %v70_v2 = vmul.f32 %v65_v49, %v44_v30  ;;  %v71_v3 = vmul.f32 %v69_v50, %v44_v30  ;;  %v584_v4 = vmul.f32 %v579_v51, %v44_v30  ;;  %v585_v5 = vmul.f32 %v583_v52, %v44_v30 }
  0x85   :  { %v82_v41 = vpop.permute.xlu1 %81  ;;  %v84_v19 = vadd.f32 %v77_v29, %v70_v2  ;;  %v85_v20 = vadd.f32 %v77_v29, %v71_v3  ;;  %v588_v30 = vadd.f32 %v584_v4, %v77_v29  ;;  %v589_v33 = vadd.f32 %v585_v5, %v77_v29 }
  0x86   :  { %v49_v42 = vpop.permute.xlu0 %48 }
  0x87   :  { %v72_v7 = vmul.f32 %v65_v49, %v49_v42  ;;  %v73_v8 = vmul.f32 %v69_v50, %v49_v42  ;;  %v586_v9 = vmul.f32 %v579_v51, %v49_v42  ;;  %v587_v10 = vmul.f32 %v583_v52, %v49_v42 }
  0x89   :  { %v86_v35 = vadd.f32 %v82_v41, %v72_v7  ;;  %v87_v36 = vadd.f32 %v82_v41, %v73_v8  ;;  %v590_v37 = vadd.f32 %v586_v9, %v82_v41  ;;  %v591_v38 = vadd.f32 %v587_v10, %v82_v41 }
  0x8a   :  { %v94_v61 = vpop.permute.xlu1 %93 }
  0x8b   :  { %v90_v6 = vpop.permute.xlu0 %89  ;;  %v116_v15 = vmul.f32 %v109_v53, %v94_v61  ;;  %v117_v16 = vmul.f32 %v113_v54, %v94_v61  ;;  %v612_v17 = vmul.f32 %v605_v55, %v94_v61  ;;  %v613_v18 = vmul.f32 %v609_v56, %v94_v61 }
  0x8c   :  { %v114_v39 = vmul.f32 %v109_v53, %v90_v6  ;;  %v115_v40 = vmul.f32 %v113_v54, %v90_v6  ;;  %v610_v42 = vmul.f32 %v605_v55, %v90_v6  ;;  %v611_v45 = vmul.f32 %v609_v56, %v90_v6 }
  0x8d   :  { %v120_v47 = vadd.f32 %v116_v15, %v86_v35  ;;  %v121_v48 = vadd.f32 %v117_v16, %v87_v36  ;;  %v616_v49 = vadd.f32 %v612_v17, %v590_v37  ;;  %v617_v50 = vadd.f32 %v613_v18, %v591_v38 }
  0x8e   :  { %v118_v3 = vadd.f32 %v114_v39, %v84_v19  ;;  %v119_v41 = vadd.f32 %v115_v40, %v85_v20  ;;  %v614_v53 = vadd.f32 %v610_v42, %v588_v30  ;;  %v615_v54 = vadd.f32 %v611_v45, %v589_v33 }
  0x8f   :  { %v124_v34 = vpop.permute.xlu1 %123 }
  0x90   :  { %v128_v46 = vpop.permute.xlu0 %127  ;;  %v148_v51 = vmul.f32 %v143_v62, %v124_v34  ;;  %v149_v52 = vmul.f32 %v147_v63, %v124_v34  ;;  %v636_v57 = vmul.f32 %v631_v0, %v124_v34  ;;  %v637_v58 = vmul.f32 %v635_v1, %v124_v34 }
  0x91   :  { %v150_v59 = vmul.f32 %v143_v62, %v128_v46  ;;  %v151_v29 = vmul.f32 %v147_v63, %v128_v46  ;;  %v638_v60 = vmul.f32 %v631_v0, %v128_v46  ;;  %v639_v61 = vmul.f32 %v635_v1, %v128_v46 }
  0x92   :  { %v152_v6 = vadd.f32 %v148_v51, %v118_v3  ;;  %v153_v7 = vadd.f32 %v149_v52, %v119_v41  ;;  %v640_v8 = vadd.f32 %v636_v57, %v614_v53  ;;  %v641_v9 = vadd.f32 %v637_v58, %v615_v54 }
  0x93   :  { %v154_v10 = vadd.f32 %v150_v59, %v120_v47  ;;  %v155_v15 = vadd.f32 %v151_v29, %v121_v48  ;;  %v642_v16 = vadd.f32 %v638_v60, %v616_v49  ;;  %v643_v62 = vadd.f32 %v639_v61, %v617_v50 }
  0x94   :  { %v158_v2 = vpop.permute.xlu1 %157  ;;  %v1321_v41 = vadd.s32 8, %v1236_v22 }
  0x95   :  { %v182_v55 = vmul.f32 %v177_v11, %v158_v2  ;;  %v183_v56 = vmul.f32 %v181_v12, %v158_v2  ;;  %v662_v4 = vmul.f32 %v657_v13, %v158_v2  ;;  %v663_v5 = vmul.f32 %v661_v14, %v158_v2 }
  0x97   :  { %v186_v19 = vadd.f32 %v182_v55, %v152_v6  ;;  %v187_v20 = vadd.f32 %v183_v56, %v153_v7  ;;  %v666_v30 = vadd.f32 %v662_v4, %v640_v8  ;;  %v667_v33 = vadd.f32 %v663_v5, %v641_v9 }
  0x98   :  { %v162_v63 = vpop.permute.xlu1 %161 }
  0x99   :  { %v184_v0 = vmul.f32 %v177_v11, %v162_v63  ;;  %v185_v1 = vmul.f32 %v181_v12, %v162_v63  ;;  %v664_v17 = vmul.f32 %v657_v13, %v162_v63  ;;  %v665_v18 = vmul.f32 %v661_v14, %v162_v63 }
  0x9b   :  { %v188_v34 = vadd.f32 %v184_v0, %v154_v10  ;;  %v189_v35 = vadd.f32 %v185_v1, %v155_v15  ;;  %v668_v36 = vadd.f32 %v664_v17, %v642_v16  ;;  %v669_v37 = vadd.f32 %v665_v18, %v643_v62 }
  0x9d   :  { %v190_v38 = vmin.f32 %v186_v19, %v188_v34  ;;  %v197_v39 = vmin.f32 %v187_v20, %v189_v35  ;;  %v670_v40 = vmin.f32 %v666_v30, %v668_v36  ;;  %v677_v42 = vmin.f32 %v667_v33, %v669_v37 }
  0x9f   :  { %v191_v45 = vrot.slane %v190_v38, 4  ;;  %v198_v46 = vrot.slane %v197_v39, 4  ;;  %v671_v47 = vrot.slane %v670_v40, 4  ;;  %v678_v48 = vrot.slane %v677_v42, 4 }
  0xa1   :  { %v192_v11 = vmin.f32 %v190_v38, %v191_v45  ;;  %v199_v12 = vmin.f32 %v197_v39, %v198_v46  ;;  %v672_v13 = vmin.f32 %v670_v40, %v671_v47  ;;  %v679_v14 = vmin.f32 %v677_v42, %v678_v48 }
  0xa3   :  { %v193_v49 = vrot.slane %v192_v11, 2  ;;  %v200_v50 = vrot.slane %v199_v12, 2  ;;  %v673_v51 = vrot.slane %v672_v13, 2  ;;  %v680_v52 = vrot.slane %v679_v14, 2 }
  0xa5   :  { %v194_v57 = vmin.f32 %v192_v11, %v193_v49  ;;  %v201_v58 = vmin.f32 %v199_v12, %v200_v50  ;;  %v674_v59 = vmin.f32 %v672_v13, %v673_v51  ;;  %v681_v29 = vmin.f32 %v679_v14, %v680_v52 }
  0xa6   :  { %v1172_v51 = vmov 0.0  }
  0xa7   :  { %v195_v60 = vrot.slane %v194_v57, 1  ;;  %v202_v61 = vrot.slane %v201_v58, 1  ;;  %v675_v2 = vrot.slane %v674_v59, 1  ;;  %v682_v3 = vrot.slane %v681_v29, 1 }
  0xa9   :  { %v196_v53 = vmin.f32 %v194_v57, %v195_v60  ;;  %v203_v54 = vmin.f32 %v201_v58, %v202_v61  ;;  %v676_v55 = vmin.f32 %v674_v59, %v675_v2  ;;  %v683_v56 = vmin.f32 %v681_v29, %v682_v3 }
  0xab   :  { %vm204_vm0 = vcmp.eq.f32.partialorder %v186_v19, %v196_v53  ;;  %vm205_vm1 = vcmp.eq.f32.partialorder %v187_v20, %v203_v54  ;;  %vm206_vm2 = vcmp.eq.f32.partialorder %v188_v34, %v196_v53  ;;  %vm207_vm3 = vcmp.eq.f32.partialorder %v189_v35, %v203_v54  ;;  %v1331_v35 = vpop.permute.xlu1 %262 }
  0xac   :  { %v208_v4 = vsel %vm204_vm0, %v1236_v22, 16  ;;  %v209_v5 = vsel %vm205_vm1, %v1236_v22, 16  ;;  %v210_v6 = vsel %vm206_vm2, %v1321_v41, 16  ;;  %v211_v7 = vsel %vm207_vm3, %v1321_v41, 16 }
  0xad   :  { %vm212_vm4 = vcmp.lt.s32.totalorder %v208_v4, %v210_v6  ;;  %vm223_vm5 = vcmp.lt.s32.totalorder %v209_v5, %v211_v7  ;;  %vm684_vm6 = vcmp.eq.f32.partialorder %v666_v30, %v676_v55  ;;  %vm685_vm7 = vcmp.eq.f32.partialorder %v667_v33, %v683_v56 }
  0xae   :  { %v213_v8 = vsel %vm212_vm4, %v208_v4, %v210_v6  ;;  %v224_v9 = vsel %vm223_vm5, %v209_v5, %v211_v7  ;;  %vm686_vm8 = vcmp.eq.f32.partialorder %v668_v36, %v676_v55  ;;  %vm687_vm9 = vcmp.eq.f32.partialorder %v669_v37, %v683_v56 }
  0xaf   :  { %v214_v10 = vrot.slane %v213_v8, 4  ;;  %v225_v15 = vrot.slane %v224_v9, 4  ;;  %v688_v16 = vsel %vm684_vm6, %v1236_v22, 16  ;;  %v689_v62 = vsel %vm685_vm7, %v1236_v22, 16  ;;  %v279_v12 = vpop.permute.xlu1 %278 }
  0xb0   :  { %v690_v63 = vsel %vm686_vm8, %v1321_v41, 16  ;;  %v691_v0 = vsel %vm687_vm9, %v1321_v41, 16  ;;  %v1171_v36 = vmov 1966171168  }
  0xb1   :  { %vm215_vm10 = vcmp.lt.s32.totalorder %v213_v8, %v214_v10  ;;  %vm226_vm11 = vcmp.lt.s32.totalorder %v224_v9, %v225_v15  ;;  %vm692_vm12 = vcmp.lt.s32.totalorder %v688_v16, %v690_v63  ;;  %vm703_vm13 = vcmp.lt.s32.totalorder %v689_v62, %v691_v0 }
  0xb2   :  { %v216_v1 = vsel %vm215_vm10, %v213_v8, %v214_v10  ;;  %v227_v17 = vsel %vm226_vm11, %v224_v9, %v225_v15  ;;  %v693_v18 = vsel %vm692_vm12, %v688_v16, %v690_v63  ;;  %v704_v19 = vsel %vm703_vm13, %v689_v62, %v691_v0 }
  0xb3   :  { %v217_v20 = vrot.slane %v216_v1, 2  ;;  %v228_v30 = vrot.slane %v227_v17, 2  ;;  %v694_v33 = vrot.slane %v693_v18, 4  ;;  %v705_v34 = vrot.slane %v704_v19, 4  ;;  %v311_v5 = vpop.permute.xlu1 %310 }
  0xb4   :  { %v1333_v37 = vunpack.c.l.s4 %v1171_v36 }
  0xb5   :  { %vm218_vm14 = vcmp.lt.s32.totalorder %v216_v1, %v217_v20  ;;  %vm229_vm15 = vcmp.lt.s32.totalorder %v227_v17, %v228_v30  ;;  %vm695_vm0 = vcmp.lt.s32.totalorder %v693_v18, %v694_v33  ;;  %vm706_vm1 = vcmp.lt.s32.totalorder %v704_v19, %v705_v34 }
  0xb6   :  { %v219_v38 = vsel %vm218_vm14, %v216_v1, %v217_v20  ;;  %v230_v39 = vsel %vm229_vm15, %v227_v17, %v228_v30  ;;  %v696_v40 = vsel %vm695_vm0, %v693_v18, %v694_v33  ;;  %v707_v42 = vsel %vm706_vm1, %v704_v19, %v705_v34  ;;  %v249_v17 = vpop.permute.xlu0 %248 }
  0xb7   :  { %v220_v45 = vrot.slane %v219_v38, 1  ;;  %v231_v46 = vrot.slane %v230_v39, 1  ;;  %v697_v47 = vrot.slane %v696_v40, 2  ;;  %v708_v48 = vrot.slane %v707_v42, 2 }
  0xb8   :  { %v509_v11 = vunpack.c.0.s8 %v1333_v37  ;;  %vm546_vm0 = vcmask 1043456   ;;  %vm523_vm1 = vcmp.lt.s32.totalorder %v37_v21, 256 }
  0xb9   :  { %vm221_vm2 = vcmp.lt.s32.totalorder %v219_v38, %v220_v45  ;;  %vm232_vm3 = vcmp.lt.s32.totalorder %v230_v39, %v231_v46  ;;  %vm698_vm4 = vcmp.lt.s32.totalorder %v696_v40, %v697_v47  ;;  %vm709_vm5 = vcmp.lt.s32.totalorder %v707_v42, %v708_v48 }
  0xba   :  { %v1336_v13 = vsel %vm221_vm2, %v219_v38, %v220_v45  ;;  %v1338_v14 = vsel %vm232_vm3, %v230_v39, %v231_v46  ;;  %v699_v49 = vsel %vm698_vm4, %v696_v40, %v697_v47  ;;  %v710_v50 = vsel %vm709_vm5, %v707_v42, %v708_v48  ;;  %v327_v39 = vpop.permute.xlu1 %326 }
  0xbb   :  { %vm234_vm6 = vcmp.eq.s32.totalorder %v1236_v22, %v1336_v13  ;;  %vm235_vm7 = vcmp.eq.s32.totalorder %v1236_v22, %v1338_v14  ;;  %vm236_vm8 = vcmp.eq.s32.totalorder %v1321_v41, %v1336_v13  ;;  %vm237_vm9 = vcmp.eq.s32.totalorder %v1321_v41, %v1338_v14 }
  0xbc   :  { %v1349_v52 = vsel %vm234_vm6, 1.0, %v1172_v51  ;;  %v1352_v57 = vsel %vm235_vm7, 1.0, %v1172_v51  ;;  %v1355_v58 = vsel %vm236_vm8, 1.0, %v1172_v51  ;;  %v1358_v59 = vsel %vm237_vm9, 1.0, %v1172_v51 }
  0xbd   :  { %v700_v29 = vrot.slane %v699_v49, 1  ;;  %v711_v60 = vrot.slane %v710_v50, 1  ;;  %v268_v61 = vrot.slane %v1349_v52, %v1255_v27  ;;  %v272_v2 = vrot.slane %v1352_v57, %v1255_v27 }
  0xbe   :  { %v284_v3 = vrot.slane %v1349_v52, %v1261_v31  ;;  %v288_v53 = vrot.slane %v1352_v57, %v1261_v31  ;;  %v254_v54 = vrot.slane %v1349_v52, %v1239_v23  ;;  %v258_v55 = vrot.slane %v1352_v57, %v1239_v23 }
  0xbf   :  { %vm701_vm10 = vcmp.lt.s32.totalorder %v699_v49, %v700_v29  ;;  %vm712_vm11 = vcmp.lt.s32.totalorder %v710_v50, %v711_v60  ;;  %v273_v56 = vmul.f32 %v268_v61, %v1331_v35  ;;  %v274_v4 = vmul.f32 %v272_v2, %v1331_v35 }
  0xc0   :  { %v1374_v6 = vsel %vm701_vm10, %v699_v49, %v700_v29  ;;  %v1376_v7 = vsel %vm712_vm11, %v710_v50, %v711_v60  ;;  %v289_v8 = vmul.f32 %v284_v3, %v279_v12  ;;  %v290_v9 = vmul.f32 %v288_v53, %v279_v12 }
  0xc1   :  { %vm714_vm12 = vcmp.eq.s32.totalorder %v1236_v22, %v1374_v6  ;;  %vm715_vm13 = vcmp.eq.s32.totalorder %v1236_v22, %v1376_v7  ;;  %vm716_vm14 = vcmp.eq.s32.totalorder %v1321_v41, %v1374_v6  ;;  %vm717_vm15 = vcmp.eq.s32.totalorder %v1321_v41, %v1376_v7 }
  0xc2   :  { %v1387_v10 = vsel %vm714_vm12, 1.0, %v1172_v51  ;;  %v1390_v15 = vsel %vm715_vm13, 1.0, %v1172_v51  ;;  %v1393_v16 = vsel %vm716_vm14, 1.0, %v1172_v51  ;;  %v1396_v62 = vsel %vm717_vm15, 1.0, %v1172_v51 }
  0xc3   :  { %v739_v63 = vrot.slane %v1387_v10, %v1255_v27  ;;  %v743_v0 = vrot.slane %v1390_v15, %v1255_v27  ;;  %v751_v41 = vrot.slane %v1387_v10, %v1261_v31  ;;  %v755_v1 = vrot.slane %v1390_v15, %v1261_v31 }
  0xc4   :  { %v259_v18 = vmul.f32 %v254_v54, %v249_v17  ;;  %v260_v19 = vmul.f32 %v258_v55, %v249_v17  ;;  %v729_v20 = vrot.slane %v1387_v10, %v1239_v23  ;;  %v733_v30 = vrot.slane %v1390_v15, %v1239_v23  ;;  %v295_v54 = vpop.permute.xlu0 %294 }
  0xc5   :  { %v744_v33 = vmul.f32 %v739_v63, %v1331_v35  ;;  %v745_v34 = vmul.f32 %v743_v0, %v1331_v35  ;;  %v756_v36 = vmul.f32 %v751_v41, %v279_v12  ;;  %v757_v38 = vmul.f32 %v755_v1, %v279_v12  ;;  %v359_v41 = vpop.permute.xlu1 %358 }
  0xc6   :  { %v275_v40 = vadd.f32 %v273_v56, %v259_v18  ;;  %v276_v42 = vadd.f32 %v274_v4, %v260_v19  ;;  %v734_v45 = vmul.f32 %v729_v20, %v249_v17  ;;  %v735_v46 = vmul.f32 %v733_v30, %v249_v17 }
  0xc7   :  { %v316_v47 = vrot.slane %v1349_v52, %v1242_v24  ;;  %v320_v48 = vrot.slane %v1352_v57, %v1242_v24  ;;  %v775_v49 = vrot.slane %v1387_v10, %v1242_v24  ;;  %v779_v50 = vrot.slane %v1390_v15, %v1242_v24 }
  0xc8   :  { %v746_v35 = vadd.f32 %v744_v33, %v734_v45  ;;  %v747_v29 = vadd.f32 %v745_v34, %v735_v46  ;;  %v291_v12 = vadd.f32 %v289_v8, %v275_v40  ;;  %v292_v60 = vadd.f32 %v290_v9, %v276_v42 }
  0xc9   :  { %v321_v61 = vmul.f32 %v316_v47, %v311_v5  ;;  %v322_v2 = vmul.f32 %v320_v48, %v311_v5  ;;  %v780_v3 = vmul.f32 %v775_v49, %v311_v5  ;;  %v781_v53 = vmul.f32 %v779_v50, %v311_v5 }
  0xca   :  { %v300_v55 = vrot.slane %v1349_v52, %v1283_v43  ;;  %v304_v56 = vrot.slane %v1352_v57, %v1283_v43  ;;  %v758_v4 = vadd.f32 %v756_v36, %v746_v35  ;;  %v759_v63 = vadd.f32 %v757_v38, %v747_v29  ;;  %v343_v35 = vpop.permute.xlu0 %342 }
  0xcb   :  { %v763_v0 = vrot.slane %v1387_v10, %v1283_v43  ;;  %v767_v8 = vrot.slane %v1390_v15, %v1283_v43  ;;  %v332_v9 = vrot.slane %v1349_v52, %v1258_v28  ;;  %v336_v5 = vrot.slane %v1352_v57, %v1258_v28 }
  0xcc   :  { %v305_v1 = vmul.f32 %v300_v55, %v295_v54  ;;  %v306_v17 = vmul.f32 %v304_v56, %v295_v54  ;;  %v787_v18 = vrot.slane %v1387_v10, %v1258_v28  ;;  %v791_v19 = vrot.slane %v1390_v15, %v1258_v28  ;;  %v375_v56 = vpop.permute.xlu1 %374 }
  0xcd   :  { %v768_v20 = vmul.f32 %v763_v0, %v295_v54  ;;  %v769_v30 = vmul.f32 %v767_v8, %v295_v54  ;;  %v337_v33 = vmul.f32 %v332_v9, %v327_v39  ;;  %v338_v34 = vmul.f32 %v336_v5, %v327_v39 }
  0xce   :  { %v307_v36 = vadd.f32 %v305_v1, %v291_v12  ;;  %v308_v38 = vadd.f32 %v306_v17, %v292_v60  ;;  %v792_v40 = vmul.f32 %v787_v18, %v327_v39  ;;  %v793_v42 = vmul.f32 %v791_v19, %v327_v39 }
  0xcf   :  { %v770_v45 = vadd.f32 %v768_v20, %v758_v4  ;;  %v771_v46 = vadd.f32 %v769_v30, %v759_v63  ;;  %v348_v47 = vrot.slane %v1349_v52, %v1264_v32  ;;  %v352_v48 = vrot.slane %v1352_v57, %v1264_v32 }
  0xd0   :  { %v323_v49 = vadd.f32 %v321_v61, %v307_v36  ;;  %v324_v50 = vadd.f32 %v322_v2, %v308_v38  ;;  %v799_v29 = vrot.slane %v1387_v10, %v1264_v32  ;;  %v803_v12 = vrot.slane %v1390_v15, %v1264_v32  ;;  %v407_v37 = vpop.permute.xlu1 %406 }
  0xd1   :  { %v782_v60 = vadd.f32 %v780_v3, %v770_v45  ;;  %v783_v54 = vadd.f32 %v781_v53, %v771_v46  ;;  %v353_v39 = vmul.f32 %v348_v47, %v343_v35  ;;  %v354_v55 = vmul.f32 %v352_v48, %v343_v35 }
  0xd2   :  { %v339_v4 = vadd.f32 %v337_v33, %v323_v49  ;;  %v340_v63 = vadd.f32 %v338_v34, %v324_v50  ;;  %v804_v0 = vmul.f32 %v799_v29, %v343_v35  ;;  %v805_v8 = vmul.f32 %v803_v12, %v343_v35  ;;  %v391_v34 = vpop.permute.xlu0 %390 }
  0xd3   :  { %v794_v9 = vadd.f32 %v792_v40, %v782_v60  ;;  %v795_v5 = vadd.f32 %v793_v42, %v783_v54  ;;  %v364_v61 = vrot.slane %v1349_v52, %v1286_v44  ;;  %v368_v2 = vrot.slane %v1352_v57, %v1286_v44 }
  0xd4   :  { %v355_v1 = vadd.f32 %v353_v39, %v339_v4  ;;  %v356_v17 = vadd.f32 %v354_v55, %v340_v63  ;;  %v811_v3 = vrot.slane %v1387_v10, %v1286_v44  ;;  %v815_v53 = vrot.slane %v1390_v15, %v1286_v44 }
  0xd5   :  { %v806_v18 = vadd.f32 %v804_v0, %v794_v9  ;;  %v807_v19 = vadd.f32 %v805_v8, %v795_v5  ;;  %v1455_v20 = vsub.s32 %v509_v11, %v1236_v22  ;;  %v369_v30 = vmul.f32 %v364_v61, %v359_v41 }
  0xd6   :  { %v370_v33 = vmul.f32 %v368_v2, %v359_v41  ;;  %v396_v36 = vrot.slane %v1355_v58, %v1255_v27  ;;  %v400_v38 = vrot.slane %v1358_v59, %v1255_v27  ;;  %v816_v40 = vmul.f32 %v811_v3, %v359_v41  ;;  %v439_v8 = vpop.permute.xlu0 %438 }
  0xd7   :  { %v817_v42 = vmul.f32 %v815_v53, %v359_v41  ;;  %v835_v45 = vrot.slane %v1393_v16, %v1255_v27  ;;  %v839_v46 = vrot.slane %v1396_v62, %v1255_v27  ;;  %v371_v22 = vadd.f32 %v369_v30, %v355_v1 }
  0xd8   :  { %v372_v11 = vadd.f32 %v370_v33, %v356_v17  ;;  %v951_v47 = vcombine.high %v1252_v26, %v1252_v26  ;;  %v539_v48 = vcombine.high %v1247_v25, %v1247_v25  ;;  %v818_v49 = vadd.f32 %v816_v40, %v806_v18  ;;  %v423_v17 = vpop.permute.xlu1 %422 }
  0xd9   :  { %v819_v50 = vadd.f32 %v817_v42, %v807_v19  ;;  %v380_v41 = vrot.slane %v1355_v58, %v1239_v23  ;;  %v384_v35 = vrot.slane %v1358_v59, %v1239_v23  ;;  %v401_v29 = vmul.f32 %v396_v36, %v391_v34 }
  0xda   :  { %v402_v12 = vmul.f32 %v400_v38, %v391_v34  ;;  %v823_v27 = vrot.slane %v1393_v16, %v1239_v23  ;;  %v827_v60 = vrot.slane %v1396_v62, %v1239_v23  ;;  %v840_v54 = vmul.f32 %v835_v45, %v391_v34 }
  0xdb   :  { %v841_v39 = vmul.f32 %v839_v46, %v391_v34  ;;  %v385_v55 = vmul.f32 %v380_v41, %v375_v56  ;;  %v386_v4 = vmul.f32 %v384_v35, %v375_v56  ;;  %v444_v9 = vrot.slane %v1355_v58, %v1242_v24  ;;  %v487_v35 = vpop.permute.xlu0 %486 }
  0xdc   :  { %v828_v63 = vmul.f32 %v823_v27, %v375_v56  ;;  %v829_v0 = vmul.f32 %v827_v60, %v375_v56  ;;  %v448_v5 = vrot.slane %v1358_v59, %v1242_v24  ;;  %v871_v1 = vrot.slane %v1393_v16, %v1242_v24  ;;  %v455_v60 = vpop.permute.xlu1 %454 }
  0xdd   :  { %v387_v61 = vadd.f32 %v385_v55, %v371_v22  ;;  %v388_v2 = vadd.f32 %v386_v4, %v372_v11  ;;  %v875_v23 = vrot.slane %v1396_v62, %v1242_v24  ;;  %v412_v56 = vrot.slane %v1355_v58, %v1261_v31 }
  0xde   :  { %v830_v3 = vadd.f32 %v828_v63, %v818_v49  ;;  %v831_v53 = vadd.f32 %v829_v0, %v819_v50  ;;  %v416_v18 = vrot.slane %v1358_v59, %v1261_v31  ;;  %v847_v33 = vrot.slane %v1393_v16, %v1261_v31 }
  0xdf   :  { %v403_v19 = vadd.f32 %v401_v29, %v387_v61  ;;  %v404_v30 = vadd.f32 %v402_v12, %v388_v2  ;;  %v851_v34 = vrot.slane %v1396_v62, %v1261_v31  ;;  %v449_v36 = vmul.f32 %v444_v9, %v439_v8 }
  0xe0   :  { %v450_v38 = vmul.f32 %v448_v5, %v439_v8  ;;  %v842_v24 = vadd.f32 %v840_v54, %v830_v3  ;;  %v843_v40 = vadd.f32 %v841_v39, %v831_v53  ;;  %v417_v42 = vmul.f32 %v412_v56, %v407_v37 }
  0xe1   :  { %v418_v45 = vmul.f32 %v416_v18, %v407_v37  ;;  %v492_v46 = vrot.slane %v1355_v58, %v1286_v44  ;;  %v496_v22 = vrot.slane %v1358_v59, %v1286_v44  ;;  %v876_v11 = vmul.f32 %v871_v1, %v439_v8 }
  0xe2   :  { %v877_v49 = vmul.f32 %v875_v23, %v439_v8  ;;  %v852_v50 = vmul.f32 %v847_v33, %v407_v37  ;;  %v853_v41 = vmul.f32 %v851_v34, %v407_v37  ;;  %v419_v29 = vadd.f32 %v417_v42, %v403_v19 }
  0xe3   :  { %v420_v12 = vadd.f32 %v418_v45, %v404_v30  ;;  %v907_v31 = vrot.slane %v1393_v16, %v1286_v44  ;;  %v911_v27 = vrot.slane %v1396_v62, %v1286_v44  ;;  %v428_v55 = vrot.slane %v1355_v58, %v1283_v43 }
  0xe4   :  { %v854_v54 = vadd.f32 %v852_v50, %v842_v24  ;;  %v855_v39 = vadd.f32 %v853_v41, %v843_v40  ;;  %v432_v4 = vrot.slane %v1358_v59, %v1283_v43  ;;  %v497_v63 = vmul.f32 %v492_v46, %v487_v35  ;;  %v471_v24 = vpop.permute.xlu1 %470 }
  0xe5   :  { %v498_v37 = vmul.f32 %v496_v22, %v487_v35  ;;  %v859_v0 = vrot.slane %v1393_v16, %v1283_v43  ;;  %v863_v8 = vrot.slane %v1396_v62, %v1283_v43  ;;  %v433_v9 = vmul.f32 %v428_v55, %v423_v17 }
  0xe6   :  { %v434_v5 = vmul.f32 %v432_v4, %v423_v17  ;;  %v460_v44 = vrot.slane %v1355_v58, %v1258_v28  ;;  %v464_v61 = vrot.slane %v1358_v59, %v1258_v28  ;;  %v883_v23 = vrot.slane %v1393_v16, %v1258_v28 }
  0xe7   :  { %v864_v2 = vmul.f32 %v859_v0, %v423_v17  ;;  %v865_v1 = vmul.f32 %v863_v8, %v423_v17  ;;  %v887_v3 = vrot.slane %v1396_v62, %v1258_v28  ;;  %v435_v53 = vadd.f32 %v433_v9, %v419_v29 }
  0xe8   :  { %v436_v56 = vadd.f32 %v434_v5, %v420_v12  ;;  %v465_v18 = vmul.f32 %v460_v44, %v455_v60  ;;  %v466_v43 = vmul.f32 %v464_v61, %v455_v60  ;;  %v888_v33 = vmul.f32 %v883_v23, %v455_v60 }
  0xe9   :  { %v866_v19 = vadd.f32 %v864_v2, %v854_v54  ;;  %v867_v30 = vadd.f32 %v865_v1, %v855_v39  ;;  %v889_v34 = vmul.f32 %v887_v3, %v455_v60  ;;  %v451_v40 = vadd.f32 %v449_v36, %v435_v53 }
  0xea   :  { %v452_v42 = vadd.f32 %v450_v38, %v436_v56  ;;  %v476_v17 = vrot.slane %v1355_v58, %v1264_v32  ;;  %v480_v45 = vrot.slane %v1358_v59, %v1264_v32  ;;  %v895_v28 = vrot.slane %v1393_v16, %v1264_v32 }
  0xeb   :  { %v878_v46 = vadd.f32 %v876_v11, %v866_v19  ;;  %v879_v22 = vadd.f32 %v877_v49, %v867_v30  ;;  %v899_v50 = vrot.slane %v1396_v62, %v1264_v32  ;;  %v467_v41 = vadd.f32 %v465_v18, %v451_v40 }
  0xec   :  { %v468_v29 = vadd.f32 %v466_v43, %v452_v42  ;;  %v481_v12 = vmul.f32 %v476_v17, %v471_v24  ;;  %v482_v60 = vmul.f32 %v480_v45, %v471_v24  ;;  %v900_v54 = vmul.f32 %v895_v28, %v471_v24 }
  0xed   :  { %v890_v36 = vadd.f32 %v888_v33, %v878_v46  ;;  %v891_v38 = vadd.f32 %v889_v34, %v879_v22  ;;  %v901_v39 = vmul.f32 %v899_v50, %v471_v24  ;;  %v912_v55 = vmul.f32 %v907_v31, %v487_v35 }
  0xee   :  { %v913_v4 = vmul.f32 %v911_v27, %v487_v35  ;;  %v483_v0 = vadd.f32 %v481_v12, %v467_v41  ;;  %v484_v8 = vadd.f32 %v482_v60, %v468_v29  ;;  %v506_v9 = vcombine.low %v1336_v13, %v1338_v14 }
  0xef   :  { %v902_v11 = vadd.f32 %v900_v54, %v890_v36  ;;  %v903_v49 = vadd.f32 %v901_v39, %v891_v38  ;;  %v922_v32 = vcombine.low %v1374_v6, %v1376_v7  ;;  %v531_v43 = vadd.f32 %v1358_v59, %v1355_v58 }
  0xf0   :  { %v499_v5 = vadd.f32 %v497_v63, %v483_v0  ;;  %v500_v44 = vadd.f32 %v498_v37, %v484_v8  ;;  %v513_v1 = vrot.slane %v506_v9, %v1455_v20  ;;  %v941_v19 = vadd.f32 %v1390_v15, %v1387_v10 }
  0xf1   :  { %v914_v61 = vadd.f32 %v912_v55, %v902_v11  ;;  %v915_v2 = vadd.f32 %v913_v4, %v903_v49  ;;  %v929_v31 = vrot.slane %v922_v32, %v1455_v20  ;;  %v944_v30 = vadd.f32 %v1396_v62, %v1393_v16 }
  0xf2   :  { %v541_v35 = vsub.f32 %v499_v5, %v1247_v25  ;;  %v542_v27 = vsub.f32 %v500_v44, %v539_v48  ;;  %v503_v13 = vcombine.low %v499_v5, %v500_v44  ;;  %v520_v7 = vrot.slane %v513_v1, %v1455_v20 }
  0xf3   :  { %v953_v14 = vsub.f32 %v914_v61, %v1252_v26  ;;  %v954_v6 = vsub.f32 %v915_v2, %v951_v47  ;;  %v936_v63 = vrot.slane %v929_v31, %v1455_v20  ;;  %v918_v3 = vcombine.low %v914_v61, %v915_v2 }
  0xf4   :  { %v543_v37 = vmul.f32 %v541_v35, %v541_v35  ;;  %v544_v23 = vmul.f32 %v542_v27, %v542_v27  ;;  %505 = vst [vmem:[#allocation2] sm:$0xff] %v503_v13  ;;  %525 = vst.msk [vmem:[#allocation4] sm:$0x3] %vm523_vm1, %v520_v7  ;;  %v528_v20 = vadd.f32 %v1352_v57, %v1349_v52  ;;  %vm27_vm2 = vcmask 7168  }
  0xf5   :  { %v955_v53 = vmul.f32 %v953_v14, %v953_v14  ;;  %v956_v25 = vmul.f32 %v954_v6, %v954_v6  ;;  %938 = vst.msk [vmem:[#allocation4 + $0x2] sm:$0x3] %vm523_vm1, %v936_v63  ;;  %921 = vst [vmem:[#allocation2 + $0x8] sm:$0xff] %v918_v3  ;;  %vm30_vm3 = vcmask 0  }
  0xf6   :  { %v547_v21 = vsel %vm546_vm0, %v543_v37, 0.0  ;;  %v548_v48 = vsel %vm546_vm0, %v544_v23, 0.0  ;;  %29 = vst.msk [vmem:[%s1638_s6 + $0x8] sm:$0xff] %vm27_vm2, %v1172_v51  ;;  %28 = vst.msk [vmem:[%s1638_s6] sm:$0xff] %vm27_vm2, %v1172_v51 }
  0xf7   :  { %v958_v26 = vsel %vm546_vm0, %v955_v53, 0.0  ;;  %v959_v47 = vsel %vm546_vm0, %v956_v25, 0.0  ;;  %v549_v56 = vadd.f32 %v548_v48, %v547_v21  ;;  %31 = vst.msk [vmem:[#allocation6] sm:$0x1] %vm30_vm3, %v1172_v51 }
  0xf8   :  { %v960_v18 = vadd.f32 %v959_v47, %v958_v26 }
  0xf9   :  { %550 = vadd.xlane.f32.xlu1 %v549_v56 }
  0xfa   :  { %961 = vadd.xlane.f32.xlu0 %v960_v18 }
  0xfd   :  { %529 = vadd.xlane.f32.xlu1 %v528_v20 }
  0xfe   :  { %532 = vadd.xlane.f32.xlu0 %v531_v43 }
 0x101   :  { %942 = vadd.xlane.f32.xlu1 %v941_v19 }
 0x102   :  { %945 = vadd.xlane.f32.xlu0 %v944_v30 }
 0x103   :  { %1096 = shalt.err (!%p1093_p4)
}
 0x104   :  { %s1097_s20 = scalar_lea.hbm %s1637_s5, 64 }
 0x105   :  { %p1098_p5 = scmp.ne.s32.totalorder %s1637_s5, %s1097_s20  ;;  %p1101_p6 = scmp.lt.u32.totalorder %s1097_s20, %s1637_s5 }
 0x107   :  { %p1103_p7 = pnand %p1101_p6, %p1098_p5 }
 0x109   :  { %1106 = shalt.err (!%p1103_p7)
}
 0x10a   :  { %s1174_s25 = smov 32   ;;  %s1175_s26 = smov 2  }
 0x10b   :  { %996 = dma.vmem_to_hbm [thread:$0]  %s991_s16, 64, %s1637_s5, [#allocation5], %s1174_s25, %s1174_s25, %s1175_s26  }
 0x10c   :  { %s1176_s29 = smov [#allocation2]  }
 0x10d   :  { %s978_s30 = sshll.u32 %s1176_s29, 4  ;;  %s979_s30 = int_to_ptr.vmem [resolvable:$true] %s978_s30 }
 0x10e   :  { %s1107_s8 = scalar_lea.vmem %s979_s30, 256  ;;  %p1112_p9 = scmp.lt.s32.totalorder %s979_s30, %s979_s30 }
 0x10f   :  { %p1108_p8 = scmp.ne.s32.totalorder %s979_s30, %s1107_s8  ;;  %p1113_p10 = scmp.lt.s32.totalorder %s1107_s8, %s1107_s8 }
 0x111   :  { %p1114_p11 = por %p1113_p10, %p1112_p9 }
 0x113   :  { %p1115_p12 = pnand %p1114_p11, %p1108_p8 }
 0x115   :  { %1118 = shalt.err (!%p1115_p12)
}
 0x116   :  { %s1119_s1 = scalar_lea.hbm %s1636_s4, 256 }
 0x117   :  { %p1120_p13 = scmp.ne.s32.totalorder %s1636_s4, %s1119_s1  ;;  %p1123_p0 = scmp.lt.u32.totalorder %s1119_s1, %s1636_s4 }
 0x119   :  { %p1125_p1 = pnand %p1123_p0, %p1120_p13 }
 0x11b   :  { %1128 = shalt.err (!%p1125_p1)
}
 0x11c   :  { %s1177_s0 = smov 128   ;;  %s1178_s12 = smov 8   ;;  %v526_v59 = vld [vmem:[%s1638_s6] sm:$0xff]  ;;  %v527_v15 = vld [vmem:[%s1638_s6 + $0x8] sm:$0xff]  ;;  %v545_v54 = vld [vmem:[#allocation6] sm:$0x1] }
 0x11d   :  { %984 = dma.vmem_to_hbm [thread:$0]  %s979_s30, 256, %s1636_s4, [#allocation3], %s1177_s0, %s1177_s0, %s1178_s12  }
 0x11e   :  { %s1179_s2 = smov [#allocation6]  }
 0x11f   :  { %s1005_s9 = sshll.u32 %s1179_s2, 4  ;;  %s1006_s9 = int_to_ptr.vmem [resolvable:$true] %s1005_s9 }
 0x120   :  { %s1129_s1 = scalar_lea.vmem %s1006_s9, 16  ;;  %s1133_s3 = scalar_lea.vmem %s1006_s9, 32 }
 0x121   :  { %p1130_p2 = scmp.ne.s32.totalorder %s1006_s9, %s1129_s1  ;;  %p1134_p3 = scmp.lt.s32.totalorder %s1006_s9, %s1006_s9 }
 0x122   :  { %p1135_p4 = scmp.lt.s32.totalorder %s1133_s3, %s1129_s1 }
 0x124   :  { %p1136_p5 = por %p1135_p4, %p1134_p3 }
 0x126   :  { %p1137_p6 = pnand %p1136_p5, %p1130_p2 }
 0x186   :  { %v551_v51 = vpop.xlane.xlu1 %550 }
 0x187   :  { %v962_v52 = vpop.xlane.xlu0 %961  ;;  %v552_v57 = vrot.slane %v551_v51, 4 }
 0x188   :  { %v963_v58 = vrot.slane %v962_v52, 4 }
 0x189   :  { %v553_v10 = vadd.f32 %v552_v57, %v551_v51 }
 0x18a   :  { %v964_v16 = vadd.f32 %v963_v58, %v962_v52  ;;  %v530_v62 = vpop.xlane.xlu1 %529 }
 0x18b   :  { %v554_v33 = vrot.slane %v553_v10, 2  ;;  %v533_v34 = vpop.xlane.xlu0 %532  ;;  %v534_v24 = vadd.f32 %v530_v62, %v526_v59 }
 0x18c   :  { %v965_v40 = vrot.slane %v964_v16, 2  ;;  %v535_v42 = vadd.f32 %v533_v34, %v527_v15 }
 0x18d   :  { %537 = vst.msk [vmem:[%s1638_s6] sm:$0xff] %vm27_vm2, %v534_v24  ;;  %v555_v17 = vadd.f32 %v554_v33, %v553_v10 }
 0x18e   :  { %538 = vst.msk [vmem:[%s1638_s6 + $0x8] sm:$0xff] %vm27_vm2, %v535_v42  ;;  %v966_v45 = vadd.f32 %v965_v40, %v964_v16  ;;  %v943_v41 = vpop.xlane.xlu1 %942 }
 0x18f   :  { %v556_v46 = vrot.slane %v555_v17, 1  ;;  %v946_v12 = vpop.xlane.xlu0 %945 }
 0x190   :  { %v967_v22 = vrot.slane %v966_v45, 1 }
 0x191   :  { %v557_v28 = vadd.f32 %v556_v46, %v555_v17 }
 0x192   :  { %v968_v50 = vadd.f32 %v967_v22, %v966_v45 }
 0x193   :  { %1031 = vpush %v557_v28 }
 0x194   :  { %v939_v29 = vld [vmem:[%s1638_s6] sm:$0xff]  ;;  %1033 = vpush %v968_v50 }
 0x195   :  { %v940_v60 = vld [vmem:[%s1638_s6 + $0x8] sm:$0xff]  ;;  %v947_v36 = vadd.f32 %v943_v41, %v939_v29 }
 0x196   :  { %v948_v38 = vadd.f32 %v946_v12, %v940_v60 }
 0x197   :  { %949 = vst.msk [vmem:[%s1638_s6] sm:$0xff] %vm27_vm2, %v947_v36 }
 0x198   :  { %950 = vst.msk [vmem:[%s1638_s6 + $0x8] sm:$0xff] %vm27_vm2, %v948_v38 }
 0x1c4   :  { %s1032_s30 = spop %1031 }
 0x1c5   :  { %v559_v39 = vstv %s1032_s30  ;;  %s1034_s8 = spop %1033 }
 0x1c6   :  { %v560_v55 = vadd.f32 %v559_v39, %v545_v54  ;;  %v970_v0 = vstv %s1034_s8 }
 0x1c8   :  { %562 = vst.msk [vmem:[#allocation6] sm:$0x1] %vm30_vm3, %v560_v55 }
 0x1cf   :  { %v957_v4 = vld [vmem:[#allocation6] sm:$0x1] }
 0x1d0   :  { %v971_v8 = vadd.f32 %v970_v0, %v957_v4 }
 0x1d2   :  { %972 = vst.msk [vmem:[#allocation6] sm:$0x1] %vm30_vm3, %v971_v8 }
 0x1d3   :  { %1140 = shalt.err (!%p1137_p6)
}
 0x1d4   :  { %s1141_s11 = scalar_lea.hbm %s1639_s7, 16 }
 0x1d5   :  { %p1142_p7 = scmp.ne.s32.totalorder %s1639_s7, %s1141_s11  ;;  %p1145_p8 = scmp.lt.u32.totalorder %s1141_s11, %s1639_s7 }
 0x1d7   :  { %p1147_p9 = pnand %p1145_p8, %p1142_p7 }
 0x1d9   :  { %1150 = shalt.err (!%p1147_p9)
}
 0x1da   :  { %1008 = dma.vmem_to_hbm [thread:$0]  %s1006_s9, 16, %s1639_s7, [#allocation5]  }
 0x1db   :  { %1151 = dma.done.wait [#allocation3], 256  }
 0x1dc   :  { %1152 = vsyncadd [#allocation3], 4294967040 }
 0x1dd   :  { %1153 = dma.done.wait [#allocation5], 80  }
 0x1de   :  { %1154 = vsyncadd [#allocation5], 4294967216 }
 0x1df   :  { %1020 = vsyncpa [#allocation3], 1 }
 0x1e0   :  { %1021 = vsyncpa [#allocation5], 1 }

</bundles_post_ra>
